<compile_context>
chip_gen: v7x
topology: tpu7x:2x2x1
jax: 0.10.0
libtpu: 0.0.40
codegen_flags: <defaults>
</compile_context>

<pallas_src>
import functools

import jax
import jax.numpy as jnp
from jax.experimental import pallas as pl
from jax.experimental.pallas import tpu as pltpu


# ----------------------------------------------------------------------------
# Fused forward kernel.  One grid step == (one batch element, one block).
# ----------------------------------------------------------------------------

def _layernorm(x, g, b, eps):
    # x: (R, E) f32, g/b: (1, E).  Two-pass variance (matches PyTorch LN).
    mean = jnp.mean(x, axis=-1, keepdims=True)
    xc = x - mean
    var = jnp.mean(xc * xc, axis=-1, keepdims=True)
    return xc * jax.lax.rsqrt(var + eps) * g + b


def _vitc_kernel(
    patch_ref, pw_ref, pb_ref, cls_ref, pos_ref,
    ln1g_ref, ln1b_ref, qkvw_ref, qkvb_ref, projw_ref, projb_ref,
    ln2g_ref, ln2b_ref, fc1w_ref, fc1b_ref, fc2w_ref, fc2b_ref,
    lnfg_ref, lnfb_ref, hw_ref, hb_ref,
    o_ref,
    x_ref,                      # persistent VMEM carry: (S, E) f32
    *, num_heads, head_dim, eps,
):
    d = pl.program_id(1)                       # transformer-block index
    S = pos_ref.shape[1]                       # num_patches + 1
    E = pw_ref.shape[1]                        # embed_dim
    scale = 1.0 / (head_dim ** 0.5)
    bf16 = jnp.bfloat16

    # ---- d == 0: patch embedding + CLS token + positional embedding --------
    @pl.when(d == 0)
    def _():
        pe = jnp.dot(patch_ref[0].astype(bf16), pw_ref[...],
                     preferred_element_type=jnp.float32) + pb_ref[...]
        pos = pos_ref[0]                                           # (S, E) f32
        cls_row = cls_ref[...] + pos[0:1, :]                       # (1, E)
        x_ref[...] = jnp.concatenate([cls_row, pe + pos[1:, :]], axis=0)

    x = x_ref[...]                                                 # (S, E) f32

    # ---- one transformer block (block d's weights streamed this step) ------
    # -- attention --
    y = _layernorm(x, ln1g_ref[0], ln1b_ref[0], eps)
    qkv = jnp.dot(y.astype(bf16), qkvw_ref[0],
                  preferred_element_type=jnp.float32) + qkvb_ref[0]  # (S, 3E)
    heads = []
    for h in range(num_heads):
        lo = h * head_dim
        hi = lo + head_dim
        qh = qkv[:, lo:hi].astype(bf16)                  # (S, hd)
        kh = qkv[:, E + lo:E + hi].astype(bf16)          # (S, hd)
        vh = qkv[:, 2 * E + lo:2 * E + hi].astype(bf16)  # (S, hd)
        s = jax.lax.dot_general(qh, kh, (((1,), (1,)), ((), ())),
                                preferred_element_type=jnp.float32) * scale
        s = s - jnp.max(s, axis=-1, keepdims=True)
        p = jnp.exp(s)
        p = p / jnp.sum(p, axis=-1, keepdims=True)       # exact divide (f32)
        heads.append(jnp.dot(p.astype(bf16), vh,
                             preferred_element_type=jnp.float32))  # (S, hd)
    attn = jnp.concatenate(heads, axis=-1)               # (S, E), lane concat
    attn = jnp.dot(attn.astype(bf16), projw_ref[0],      # one full-K projection
                   preferred_element_type=jnp.float32) + projb_ref[0]
    x = x + attn                                          # residual

    # -- MLP --
    y = _layernorm(x, ln2g_ref[0], ln2b_ref[0], eps)
    h1 = jnp.dot(y.astype(bf16), fc1w_ref[0],
                 preferred_element_type=jnp.float32) + fc1b_ref[0]
    # TODO(synk): PyTorch nn.GELU defaults to exact erf; tanh approximation is
    # used here for a guaranteed TPU (EUP) lowering (~1e-3 relative deviation).
    h1 = jax.nn.gelu(h1, approximate=True)
    h2 = jnp.dot(h1.astype(bf16), fc2w_ref[0],
                 preferred_element_type=jnp.float32) + fc2b_ref[0]
    x = x + h2                                            # residual
    x_ref[...] = x                                        # carry to next block

    # ---- last block: final LayerNorm on CLS row + classification head ------
    @pl.when(d == pl.num_programs(1) - 1)
    def _():
        cls_tok = x[0:1, :]                               # x[:, 0]
        yf = _layernorm(cls_tok, lnfg_ref[...], lnfb_ref[...], eps)
        logits = jnp.dot(yf.astype(bf16), hw_ref[...],
                         preferred_element_type=jnp.float32) + hb_ref[...]
        o_ref[0] = logits.astype(o_ref.dtype)             # (1, nc)


# ----------------------------------------------------------------------------
# Forward wrapper (layout glue + one pallas_call)
# ----------------------------------------------------------------------------

def vitc_forward(x_nchw, params, cfg):
    B, C, H, W = x_nchw.shape
    p = cfg["patch_size"]
    E = cfg["embed_dim"]
    nh = cfg["num_heads"]
    assert E % nh == 0
    hd = E // nh
    depth = cfg["depth"]
    mlp = cfg["mlp_ratio"] * E
    nc = cfg["num_classes"]

    hp, wp = H // p, W // p
    num_patches = hp * wp
    patch_dim = C * p * p
    S = num_patches + 1

    # Patchify (Conv2d k=s=patch == patch extraction; ordering C, ph, pw).
    patches = x_nchw.reshape(B, C, hp, p, wp, p)
    patches = patches.transpose(0, 2, 4, 1, 3, 5).reshape(B, num_patches, patch_dim)

    bf16 = jnp.bfloat16
    blocks = params["blocks"]
    stk = lambda name: jnp.stack([blk[name] for blk in blocks], axis=0)

    # Per-block weights stacked along a leading depth axis; matmul weights bf16.
    ln1_g = stk("ln1_g").reshape(depth, 1, E)
    ln1_b = stk("ln1_b").reshape(depth, 1, E)
    qkv_w = stk("qkv_w").astype(bf16)                     # (depth, E, 3E)
    qkv_b = stk("qkv_b").reshape(depth, 1, 3 * E)
    proj_w = stk("proj_w").astype(bf16)                   # (depth, E, E)
    proj_b = stk("proj_b").reshape(depth, 1, E)
    ln2_g = stk("ln2_g").reshape(depth, 1, E)
    ln2_b = stk("ln2_b").reshape(depth, 1, E)
    fc1_w = stk("fc1_w").astype(bf16)                     # (depth, E, mlp)
    fc1_b = stk("fc1_b").reshape(depth, 1, mlp)
    fc2_w = stk("fc2_w").astype(bf16)                     # (depth, mlp, E)
    fc2_b = stk("fc2_b").reshape(depth, 1, E)

    args = (
        patches,
        params["patch_w"].astype(bf16), params["patch_b"].reshape(1, E),
        params["cls_token"].reshape(1, E), params["pos_embed"],
        ln1_g, ln1_b, qkv_w, qkv_b, proj_w, proj_b,
        ln2_g, ln2_b, fc1_w, fc1_b, fc2_w, fc2_b,
        params["lnf_g"].reshape(1, E), params["lnf_b"].reshape(1, E),
        params["head_w"].astype(bf16), params["head_b"].reshape(1, nc),
    )

    # grid = (batch, depth): batch parallel (megacore), depth carries state.
    batch_map = lambda b, d: (b, 0, 0)      # revisited across d (one DMA per b)
    const2 = lambda b, d: (0, 0)
    const3 = lambda b, d: (0, 0, 0)
    block_map = lambda b, d: (d, 0, 0)      # stream one transformer block / step

    in_specs = [
        pl.BlockSpec((1, num_patches, patch_dim), batch_map),   # patches
        pl.BlockSpec((patch_dim, E), const2),                   # patch_w
        pl.BlockSpec((1, E), const2),                           # patch_b
        pl.BlockSpec((1, E), const2),                           # cls_token
        pl.BlockSpec((1, S, E), const3),                        # pos_embed
        pl.BlockSpec((1, 1, E), block_map),                     # ln1_g
        pl.BlockSpec((1, 1, E), block_map),                     # ln1_b
        pl.BlockSpec((1, E, 3 * E), block_map),                 # qkv_w
        pl.BlockSpec((1, 1, 3 * E), block_map),                 # qkv_b
        pl.BlockSpec((1, E, E), block_map),                     # proj_w
        pl.BlockSpec((1, 1, E), block_map),                     # proj_b
        pl.BlockSpec((1, 1, E), block_map),                     # ln2_g
        pl.BlockSpec((1, 1, E), block_map),                     # ln2_b
        pl.BlockSpec((1, E, mlp), block_map),                   # fc1_w
        pl.BlockSpec((1, 1, mlp), block_map),                   # fc1_b
        pl.BlockSpec((1, mlp, E), block_map),                   # fc2_w
        pl.BlockSpec((1, 1, E), block_map),                     # fc2_b
        pl.BlockSpec((1, E), const2),                           # lnf_g
        pl.BlockSpec((1, E), const2),                           # lnf_b
        pl.BlockSpec((E, nc), const2),                          # head_w
        pl.BlockSpec((1, nc), const2),                          # head_b
    ]

    # Advisory cost estimate so XLA schedules around the fused custom call.
    flops_block = (2 * S * E * 3 * E) + (4 * S * S * E) + (2 * S * E * E) \
        + (4 * S * E * mlp)
    flops = B * (2 * num_patches * patch_dim * E + depth * flops_block
                 + 2 * E * nc)
    transcendentals = B * depth * (nh * S * S + S * mlp)
    bytes_accessed = sum(int(a.size) * a.dtype.itemsize for a in args) \
        + B * nc * 4
    cost = pl.CostEstimate(flops=flops, transcendentals=transcendentals,
                           bytes_accessed=bytes_accessed)

    out = pl.pallas_call(
        functools.partial(_vitc_kernel, num_heads=nh, head_dim=hd,
                          eps=1e-6),   # timm ViT LayerNorm eps
        out_shape=jax.ShapeDtypeStruct((B, 1, nc), jnp.float32),
        grid=(B, depth),
        in_specs=in_specs,
        out_specs=pl.BlockSpec((1, 1, nc), batch_map),
        scratch_shapes=[pltpu.VMEM((S, E), jnp.float32)],   # carried token matrix
        compiler_params=pltpu.CompilerParams(
            dimension_semantics=("parallel", "arbitrary"),
            vmem_limit_bytes=48 * 1024 * 1024),   # > default scoped, < v7x 64 MiB
        cost_estimate=cost,
    )(*args)
    return out.reshape(B, nc)


# ----------------------------------------------------------------------------
# Deterministic parameter construction
# ----------------------------------------------------------------------------

def init_params(key, cfg):
    C, p, E = cfg["in_chans"], cfg["patch_size"], cfg["embed_dim"]
    depth, nc = cfg["depth"], cfg["num_classes"]
    mlp = cfg["mlp_ratio"] * E
    num_patches = (cfg["img_size"] // p) ** 2

    def nrm(k, shape, scale=0.02):
        return (scale * jax.random.normal(k, shape)).astype(jnp.float32)

    keys = iter(jax.random.split(key, 16 + depth * 8))
    params = {
        "patch_w": nrm(next(keys), (C * p * p, E)),
        "patch_b": jnp.zeros((E,), jnp.float32),
        "cls_token": nrm(next(keys), (1, 1, E)),
        "pos_embed": nrm(next(keys), (1, num_patches + 1, E)),
        "lnf_g": jnp.ones((E,), jnp.float32),
        "lnf_b": jnp.zeros((E,), jnp.float32),
        "head_w": nrm(next(keys), (E, nc)),
        "head_b": jnp.zeros((nc,), jnp.float32),
        "blocks": [],
    }
    for _ in range(depth):
        params["blocks"].append({
            "ln1_g": jnp.ones((E,), jnp.float32),
            "ln1_b": jnp.zeros((E,), jnp.float32),
            "qkv_w": nrm(next(keys), (E, 3 * E)),
            "qkv_b": jnp.zeros((3 * E,), jnp.float32),
            "proj_w": nrm(next(keys), (E, E)),
            "proj_b": jnp.zeros((E,), jnp.float32),
            "ln2_g": jnp.ones((E,), jnp.float32),
            "ln2_b": jnp.zeros((E,), jnp.float32),
            "fc1_w": nrm(next(keys), (E, mlp)),
            "fc1_b": jnp.zeros((mlp,), jnp.float32),
            "fc2_w": nrm(next(keys), (mlp, E)),
            "fc2_b": jnp.zeros((E,), jnp.float32),
        })
    return params


if __name__ == "__main__":
    cfg = dict(
        img_size=16, patch_size=8, in_chans=4,
        embed_dim=32, depth=2, num_heads=4, mlp_ratio=4,
        num_classes=10,
    )
    key = jax.random.PRNGKey(0)
    k_x, k_p = jax.random.split(key)
    x = jax.random.normal(
        k_x, (2, cfg["in_chans"], cfg["img_size"], cfg["img_size"]),
        dtype=jnp.float32)                            # NCHW, like PyTorch
    params = init_params(k_p, cfg)

    logits = jax.jit(functools.partial(vitc_forward, cfg=cfg))(x, params)
    logits = jax.block_until_ready(logits)
    assert logits.shape == (2, cfg["num_classes"]), logits.shape
    assert bool(jnp.all(jnp.isfinite(logits)))
    print("KERNEL_OK")
</pallas_src>

<mosaic_0001>
module attributes {stable_mosaic.version = 11 : i64} {
  func.func @_vitc_kernel(%arg0: i32, %arg1: i32, %arg2: memref<1x4x256xf32, #tpu.memory_space<vmem>>, %arg3: memref<256x32xbf16, #tpu.memory_space<vmem>>, %arg4: memref<1x32xf32, #tpu.memory_space<vmem>>, %arg5: memref<1x32xf32, #tpu.memory_space<vmem>>, %arg6: memref<1x5x32xf32, #tpu.memory_space<vmem>>, %arg7: memref<1x1x32xf32, #tpu.memory_space<vmem>>, %arg8: memref<1x1x32xf32, #tpu.memory_space<vmem>>, %arg9: memref<1x32x96xbf16, #tpu.memory_space<vmem>>, %arg10: memref<1x1x96xf32, #tpu.memory_space<vmem>>, %arg11: memref<1x32x32xbf16, #tpu.memory_space<vmem>>, %arg12: memref<1x1x32xf32, #tpu.memory_space<vmem>>, %arg13: memref<1x1x32xf32, #tpu.memory_space<vmem>>, %arg14: memref<1x1x32xf32, #tpu.memory_space<vmem>>, %arg15: memref<1x32x128xbf16, #tpu.memory_space<vmem>>, %arg16: memref<1x1x128xf32, #tpu.memory_space<vmem>>, %arg17: memref<1x128x32xbf16, #tpu.memory_space<vmem>>, %arg18: memref<1x1x32xf32, #tpu.memory_space<vmem>>, %arg19: memref<1x32xf32, #tpu.memory_space<vmem>>, %arg20: memref<1x32xf32, #tpu.memory_space<vmem>>, %arg21: memref<32x10xbf16, #tpu.memory_space<vmem>>, %arg22: memref<1x10xf32, #tpu.memory_space<vmem>>, %arg23: memref<1x1x10xf32, #tpu.memory_space<vmem>>, %arg24: memref<5x32xf32, #tpu.memory_space<vmem>>) attributes {dimension_semantics = [#tpu.dimension_semantics<parallel>, #tpu.dimension_semantics<arbitrary>], iteration_bounds = array<i64: 2, 2>, scalar_prefetch = 0 : i64, scratch_operands = 1 : i64, tpu.core_type = #tpu.core_type<tc>, window_params = [{transform_indices = @transform_0, window_bounds = array<i64: 1, 4, 256>}, {pipeline_mode = #tpu.pipeline_mode<synchronous>, transform_indices = @transform_1, window_bounds = array<i64: 256, 32>}, {pipeline_mode = #tpu.pipeline_mode<synchronous>, transform_indices = @transform_2, window_bounds = array<i64: 1, 32>}, {pipeline_mode = #tpu.pipeline_mode<synchronous>, transform_indices = @transform_3, window_bounds = array<i64: 1, 32>}, {pipeline_mode = #tpu.pipeline_mode<synchronous>, transform_indices = @transform_4, window_bounds = array<i64: 1, 5, 32>}, {transform_indices = @transform_5, window_bounds = array<i64: 1, 1, 32>}, {transform_indices = @transform_6, window_bounds = array<i64: 1, 1, 32>}, {transform_indices = @transform_7, window_bounds = array<i64: 1, 32, 96>}, {transform_indices = @transform_8, window_bounds = array<i64: 1, 1, 96>}, {transform_indices = @transform_9, window_bounds = array<i64: 1, 32, 32>}, {transform_indices = @transform_10, window_bounds = array<i64: 1, 1, 32>}, {transform_indices = @transform_11, window_bounds = array<i64: 1, 1, 32>}, {transform_indices = @transform_12, window_bounds = array<i64: 1, 1, 32>}, {transform_indices = @transform_13, window_bounds = array<i64: 1, 32, 128>}, {transform_indices = @transform_14, window_bounds = array<i64: 1, 1, 128>}, {transform_indices = @transform_15, window_bounds = array<i64: 1, 128, 32>}, {transform_indices = @transform_16, window_bounds = array<i64: 1, 1, 32>}, {pipeline_mode = #tpu.pipeline_mode<synchronous>, transform_indices = @transform_17, window_bounds = array<i64: 1, 32>}, {pipeline_mode = #tpu.pipeline_mode<synchronous>, transform_indices = @transform_18, window_bounds = array<i64: 1, 32>}, {pipeline_mode = #tpu.pipeline_mode<synchronous>, transform_indices = @transform_19, window_bounds = array<i64: 32, 10>}, {pipeline_mode = #tpu.pipeline_mode<synchronous>, transform_indices = @transform_20, window_bounds = array<i64: 1, 10>}, {transform_indices = @transform_21, window_bounds = array<i64: 1, 1, 10>}]} {
    %c0_i32 = arith.constant 0 : i32
    %0 = arith.cmpi eq, %arg1, %c0_i32 : i32
    %1 = arith.extui %0 : i1 to i32
    %c0_i32_0 = arith.constant 0 : i32
    %2 = arith.cmpi ne, %1, %c0_i32_0 : i32
    scf.if %2 {
      %c0_78 = arith.constant 0 : index
      %c0_79 = arith.constant 0 : index
      %c0_80 = arith.constant 0 : index
      %184 = vector.load %arg2[%c0_78, %c0_79, %c0_80] : memref<1x4x256xf32, #tpu.memory_space<vmem>>, vector<1x4x256xf32>
      %185 = vector.shape_cast %184 : vector<1x4x256xf32> to vector<4x256xf32>
      %186 = arith.truncf %185 : vector<4x256xf32> to vector<4x256xbf16>
      %c0_81 = arith.constant 0 : index
      %c0_82 = arith.constant 0 : index
      %187 = vector.load %arg3[%c0_81, %c0_82] : memref<256x32xbf16, #tpu.memory_space<vmem>>, vector<256x32xbf16>
      %cst_83 = arith.constant dense<0.000000e+00> : vector<4x32xf32>
      %188 = tpu.matmul %186, %187, %cst_83 {dimension_numbers = #tpu.dot_dimension_numbers<[1], [0], [0], [1], [0, 0, 1, 1], [], []>} : vector<4x256xbf16>, vector<256x32xbf16>, vector<4x32xf32> -> vector<4x32xf32>
      %c0_84 = arith.constant 0 : index
      %c0_85 = arith.constant 0 : index
      %189 = vector.load %arg4[%c0_84, %c0_85] : memref<1x32xf32, #tpu.memory_space<vmem>>, vector<1x32xf32>
      %190 = vector.broadcast %189 : vector<1x32xf32> to vector<4x32xf32>
      %191 = arith.addf %188, %190 : vector<4x32xf32>
      %c0_86 = arith.constant 0 : index
      %c0_87 = arith.constant 0 : index
      %c0_88 = arith.constant 0 : index
      %192 = vector.load %arg6[%c0_86, %c0_87, %c0_88] : memref<1x5x32xf32, #tpu.memory_space<vmem>>, vector<1x5x32xf32>
      %193 = vector.shape_cast %192 : vector<1x5x32xf32> to vector<5x32xf32>
      %c0_89 = arith.constant 0 : index
      %c0_90 = arith.constant 0 : index
      %194 = vector.load %arg5[%c0_89, %c0_90] : memref<1x32xf32, #tpu.memory_space<vmem>>, vector<1x32xf32>
      %195 = vector.extract_strided_slice %193 {offsets = [0, 0], sizes = [1, 32], strides = [1, 1]} : vector<5x32xf32> to vector<1x32xf32>
      %196 = arith.addf %194, %195 : vector<1x32xf32>
      %197 = vector.extract_strided_slice %193 {offsets = [1, 0], sizes = [4, 32], strides = [1, 1]} : vector<5x32xf32> to vector<4x32xf32>
      %198 = arith.addf %191, %197 : vector<4x32xf32>
      %199 = tpu.concatenate %196, %198 in 0 : vector<1x32xf32>, vector<4x32xf32> -> vector<5x32xf32>
      %c0_91 = arith.constant 0 : index
      %c0_92 = arith.constant 0 : index
      %200 = vector.load %arg24[%c0_91, %c0_92] : memref<5x32xf32, #tpu.memory_space<vmem>>, vector<5x32xf32>
      tpu.vector_store %arg24[%c0_91, %c0_92], %199 {strides = array<i32>} : memref<5x32xf32, #tpu.memory_space<vmem>>, vector<5x32xf32>,
    } else {
    }
    %c0 = arith.constant 0 : index
    %c0_1 = arith.constant 0 : index
    %3 = vector.load %arg24[%c0, %c0_1] : memref<5x32xf32, #tpu.memory_space<vmem>>, vector<5x32xf32>
    %c0_2 = arith.constant 0 : index
    %c0_3 = arith.constant 0 : index
    %c0_4 = arith.constant 0 : index
    %4 = vector.load %arg7[%c0_2, %c0_3, %c0_4] : memref<1x1x32xf32, #tpu.memory_space<vmem>>, vector<1x1x32xf32>
    %5 = vector.shape_cast %4 : vector<1x1x32xf32> to vector<1x32xf32>
    %c0_5 = arith.constant 0 : index
    %c0_6 = arith.constant 0 : index
    %c0_7 = arith.constant 0 : index
    %6 = vector.load %arg8[%c0_5, %c0_6, %c0_7] : memref<1x1x32xf32, #tpu.memory_space<vmem>>, vector<1x1x32xf32>
    %7 = vector.shape_cast %6 : vector<1x1x32xf32> to vector<1x32xf32>
    %cst = arith.constant dense<0.000000e+00> : vector<5xf32>
    %8 = vector.multi_reduction <add>, %3, %cst [1] : vector<5x32xf32> to vector<5xf32>
    %9 = vector.shape_cast %8 : vector<5xf32> to vector<5x1xf32>
    %cst_8 = arith.constant 3.200000e+01 : f32
    %10 = vector.broadcast %cst_8 : f32 to vector<5x1xf32>
    %11 = arith.divf %9, %10 : vector<5x1xf32>
    %12 = vector.broadcast %11 : vector<5x1xf32> to vector<5x32xf32>
    %13 = arith.subf %3, %12 : vector<5x32xf32>
    %14 = arith.mulf %13, %13 : vector<5x32xf32>
    %cst_9 = arith.constant dense<0.000000e+00> : vector<5xf32>
    %15 = vector.multi_reduction <add>, %14, %cst_9 [1] : vector<5x32xf32> to vector<5xf32>
    %16 = vector.shape_cast %15 : vector<5xf32> to vector<5x1xf32>
    %cst_10 = arith.constant 3.200000e+01 : f32
    %17 = vector.broadcast %cst_10 : f32 to vector<5x1xf32>
    %18 = arith.divf %16, %17 : vector<5x1xf32>
    %cst_11 = arith.constant 9.99999997E-7 : f32
    %19 = vector.broadcast %cst_11 : f32 to vector<5x1xf32>
    %20 = arith.addf %18, %19 : vector<5x1xf32>
    %21 = math.rsqrt %20 : vector<5x1xf32>
    %22 = vector.broadcast %21 : vector<5x1xf32> to vector<5x32xf32>
    %23 = arith.mulf %13, %22 : vector<5x32xf32>
    %24 = vector.broadcast %5 : vector<1x32xf32> to vector<5x32xf32>
    %25 = arith.mulf %23, %24 : vector<5x32xf32>
    %26 = vector.broadcast %7 : vector<1x32xf32> to vector<5x32xf32>
    %27 = arith.addf %25, %26 : vector<5x32xf32>
    %28 = arith.truncf %27 : vector<5x32xf32> to vector<5x32xbf16>
    %c0_12 = arith.constant 0 : index
    %c0_13 = arith.constant 0 : index
    %c0_14 = arith.constant 0 : index
    %29 = vector.load %arg9[%c0_12, %c0_13, %c0_14] : memref<1x32x96xbf16, #tpu.memory_space<vmem>>, vector<1x32x96xbf16>
    %30 = vector.shape_cast %29 : vector<1x32x96xbf16> to vector<32x96xbf16>
    %cst_15 = arith.constant dense<0.000000e+00> : vector<5x96xf32>
    %31 = tpu.matmul %28, %30, %cst_15 {dimension_numbers = #tpu.dot_dimension_numbers<[1], [0], [0], [1], [0, 0, 1, 1], [], []>} : vector<5x32xbf16>, vector<32x96xbf16>, vector<5x96xf32> -> vector<5x96xf32>
    %c0_16 = arith.constant 0 : index
    %c0_17 = arith.constant 0 : index
    %c0_18 = arith.constant 0 : index
    %32 = vector.load %arg10[%c0_16, %c0_17, %c0_18] : memref<1x1x96xf32, #tpu.memory_space<vmem>>, vector<1x1x96xf32>
    %33 = vector.shape_cast %32 : vector<1x1x96xf32> to vector<1x96xf32>
    %34 = vector.broadcast %33 : vector<1x96xf32> to vector<5x96xf32>
    %35 = arith.addf %31, %34 : vector<5x96xf32>
    %36 = vector.extract_strided_slice %35 {offsets = [0, 0], sizes = [5, 8], strides = [1, 1]} : vector<5x96xf32> to vector<5x8xf32>
    %37 = arith.truncf %36 : vector<5x8xf32> to vector<5x8xbf16>
    %38 = vector.extract_strided_slice %35 {offsets = [0, 32], sizes = [5, 8], strides = [1, 1]} : vector<5x96xf32> to vector<5x8xf32>
    %39 = arith.truncf %38 : vector<5x8xf32> to vector<5x8xbf16>
    %40 = vector.extract_strided_slice %35 {offsets = [0, 64], sizes = [5, 8], strides = [1, 1]} : vector<5x96xf32> to vector<5x8xf32>
    %41 = arith.truncf %40 : vector<5x8xf32> to vector<5x8xbf16>
    %cst_19 = arith.constant dense<0.000000e+00> : vector<5x5xf32>
    %42 = tpu.matmul %37, %39, %cst_19 {dimension_numbers = #tpu.dot_dimension_numbers<[1], [1], [0], [0], [0, 0, 1, 0], [], []>} : vector<5x8xbf16>, vector<5x8xbf16>, vector<5x5xf32> -> vector<5x5xf32>
    %cst_20 = arith.constant 0.353553385 : f32
    %43 = vector.broadcast %cst_20 : f32 to vector<5x5xf32>
    %44 = arith.mulf %42, %43 : vector<5x5xf32>
    %cst_21 = arith.constant dense<0xFF800000> : vector<5xf32>
    %45 = vector.multi_reduction <maximumf>, %44, %cst_21 [1] : vector<5x5xf32> to vector<5xf32>
    %46 = vector.shape_cast %45 : vector<5xf32> to vector<5x1xf32>
    %47 = vector.broadcast %46 : vector<5x1xf32> to vector<5x5xf32>
    %48 = arith.subf %44, %47 : vector<5x5xf32>
    %49 = math.exp %48 : vector<5x5xf32>
    %cst_22 = arith.constant dense<0.000000e+00> : vector<5xf32>
    %50 = vector.multi_reduction <add>, %49, %cst_22 [1] : vector<5x5xf32> to vector<5xf32>
    %51 = vector.shape_cast %50 : vector<5xf32> to vector<5x1xf32>
    %52 = vector.broadcast %51 : vector<5x1xf32> to vector<5x5xf32>
    %53 = arith.divf %49, %52 : vector<5x5xf32>
    %54 = arith.truncf %53 : vector<5x5xf32> to vector<5x5xbf16>
    %cst_23 = arith.constant dense<0.000000e+00> : vector<5x8xf32>
    %55 = tpu.matmul %54, %41, %cst_23 {dimension_numbers = #tpu.dot_dimension_numbers<[1], [0], [0], [1], [0, 0, 1, 1], [], []>} : vector<5x5xbf16>, vector<5x8xbf16>, vector<5x8xf32> -> vector<5x8xf32>
    %56 = vector.extract_strided_slice %35 {offsets = [0, 8], sizes = [5, 8], strides = [1, 1]} : vector<5x96xf32> to vector<5x8xf32>
    %57 = arith.truncf %56 : vector<5x8xf32> to vector<5x8xbf16>
    %58 = vector.extract_strided_slice %35 {offsets = [0, 40], sizes = [5, 8], strides = [1, 1]} : vector<5x96xf32> to vector<5x8xf32>
    %59 = arith.truncf %58 : vector<5x8xf32> to vector<5x8xbf16>
    %60 = vector.extract_strided_slice %35 {offsets = [0, 72], sizes = [5, 8], strides = [1, 1]} : vector<5x96xf32> to vector<5x8xf32>
    %61 = arith.truncf %60 : vector<5x8xf32> to vector<5x8xbf16>
    %cst_24 = arith.constant dense<0.000000e+00> : vector<5x5xf32>
    %62 = tpu.matmul %57, %59, %cst_24 {dimension_numbers = #tpu.dot_dimension_numbers<[1], [1], [0], [0], [0, 0, 1, 0], [], []>} : vector<5x8xbf16>, vector<5x8xbf16>, vector<5x5xf32> -> vector<5x5xf32>
    %cst_25 = arith.constant 0.353553385 : f32
    %63 = vector.broadcast %cst_25 : f32 to vector<5x5xf32>
    %64 = arith.mulf %62, %63 : vector<5x5xf32>
    %cst_26 = arith.constant dense<0xFF800000> : vector<5xf32>
    %65 = vector.multi_reduction <maximumf>, %64, %cst_26 [1] : vector<5x5xf32> to vector<5xf32>
    %66 = vector.shape_cast %65 : vector<5xf32> to vector<5x1xf32>
    %67 = vector.broadcast %66 : vector<5x1xf32> to vector<5x5xf32>
    %68 = arith.subf %64, %67 : vector<5x5xf32>
    %69 = math.exp %68 : vector<5x5xf32>
    %cst_27 = arith.constant dense<0.000000e+00> : vector<5xf32>
    %70 = vector.multi_reduction <add>, %69, %cst_27 [1] : vector<5x5xf32> to vector<5xf32>
    %71 = vector.shape_cast %70 : vector<5xf32> to vector<5x1xf32>
    %72 = vector.broadcast %71 : vector<5x1xf32> to vector<5x5xf32>
    %73 = arith.divf %69, %72 : vector<5x5xf32>
    %74 = arith.truncf %73 : vector<5x5xf32> to vector<5x5xbf16>
    %cst_28 = arith.constant dense<0.000000e+00> : vector<5x8xf32>
    %75 = tpu.matmul %74, %61, %cst_28 {dimension_numbers = #tpu.dot_dimension_numbers<[1], [0], [0], [1], [0, 0, 1, 1], [], []>} : vector<5x5xbf16>, vector<5x8xbf16>, vector<5x8xf32> -> vector<5x8xf32>
    %76 = vector.extract_strided_slice %35 {offsets = [0, 16], sizes = [5, 8], strides = [1, 1]} : vector<5x96xf32> to vector<5x8xf32>
    %77 = arith.truncf %76 : vector<5x8xf32> to vector<5x8xbf16>
    %78 = vector.extract_strided_slice %35 {offsets = [0, 48], sizes = [5, 8], strides = [1, 1]} : vector<5x96xf32> to vector<5x8xf32>
    %79 = arith.truncf %78 : vector<5x8xf32> to vector<5x8xbf16>
    %80 = vector.extract_strided_slice %35 {offsets = [0, 80], sizes = [5, 8], strides = [1, 1]} : vector<5x96xf32> to vector<5x8xf32>
    %81 = arith.truncf %80 : vector<5x8xf32> to vector<5x8xbf16>
    %cst_29 = arith.constant dense<0.000000e+00> : vector<5x5xf32>
    %82 = tpu.matmul %77, %79, %cst_29 {dimension_numbers = #tpu.dot_dimension_numbers<[1], [1], [0], [0], [0, 0, 1, 0], [], []>} : vector<5x8xbf16>, vector<5x8xbf16>, vector<5x5xf32> -> vector<5x5xf32>
    %cst_30 = arith.constant 0.353553385 : f32
    %83 = vector.broadcast %cst_30 : f32 to vector<5x5xf32>
    %84 = arith.mulf %82, %83 : vector<5x5xf32>
    %cst_31 = arith.constant dense<0xFF800000> : vector<5xf32>
    %85 = vector.multi_reduction <maximumf>, %84, %cst_31 [1] : vector<5x5xf32> to vector<5xf32>
    %86 = vector.shape_cast %85 : vector<5xf32> to vector<5x1xf32>
    %87 = vector.broadcast %86 : vector<5x1xf32> to vector<5x5xf32>
    %88 = arith.subf %84, %87 : vector<5x5xf32>
    %89 = math.exp %88 : vector<5x5xf32>
    %cst_32 = arith.constant dense<0.000000e+00> : vector<5xf32>
    %90 = vector.multi_reduction <add>, %89, %cst_32 [1] : vector<5x5xf32> to vector<5xf32>
    %91 = vector.shape_cast %90 : vector<5xf32> to vector<5x1xf32>
    %92 = vector.broadcast %91 : vector<5x1xf32> to vector<5x5xf32>
    %93 = arith.divf %89, %92 : vector<5x5xf32>
    %94 = arith.truncf %93 : vector<5x5xf32> to vector<5x5xbf16>
    %cst_33 = arith.constant dense<0.000000e+00> : vector<5x8xf32>
    %95 = tpu.matmul %94, %81, %cst_33 {dimension_numbers = #tpu.dot_dimension_numbers<[1], [0], [0], [1], [0, 0, 1, 1], [], []>} : vector<5x5xbf16>, vector<5x8xbf16>, vector<5x8xf32> -> vector<5x8xf32>
    %96 = vector.extract_strided_slice %35 {offsets = [0, 24], sizes = [5, 8], strides = [1, 1]} : vector<5x96xf32> to vector<5x8xf32>
    %97 = arith.truncf %96 : vector<5x8xf32> to vector<5x8xbf16>
    %98 = vector.extract_strided_slice %35 {offsets = [0, 56], sizes = [5, 8], strides = [1, 1]} : vector<5x96xf32> to vector<5x8xf32>
    %99 = arith.truncf %98 : vector<5x8xf32> to vector<5x8xbf16>
    %100 = vector.extract_strided_slice %35 {offsets = [0, 88], sizes = [5, 8], strides = [1, 1]} : vector<5x96xf32> to vector<5x8xf32>
    %101 = arith.truncf %100 : vector<5x8xf32> to vector<5x8xbf16>
    %cst_34 = arith.constant dense<0.000000e+00> : vector<5x5xf32>
    %102 = tpu.matmul %97, %99, %cst_34 {dimension_numbers = #tpu.dot_dimension_numbers<[1], [1], [0], [0], [0, 0, 1, 0], [], []>} : vector<5x8xbf16>, vector<5x8xbf16>, vector<5x5xf32> -> vector<5x5xf32>
    %cst_35 = arith.constant 0.353553385 : f32
    %103 = vector.broadcast %cst_35 : f32 to vector<5x5xf32>
    %104 = arith.mulf %102, %103 : vector<5x5xf32>
    %cst_36 = arith.constant dense<0xFF800000> : vector<5xf32>
    %105 = vector.multi_reduction <maximumf>, %104, %cst_36 [1] : vector<5x5xf32> to vector<5xf32>
    %106 = vector.shape_cast %105 : vector<5xf32> to vector<5x1xf32>
    %107 = vector.broadcast %106 : vector<5x1xf32> to vector<5x5xf32>
    %108 = arith.subf %104, %107 : vector<5x5xf32>
    %109 = math.exp %108 : vector<5x5xf32>
    %cst_37 = arith.constant dense<0.000000e+00> : vector<5xf32>
    %110 = vector.multi_reduction <add>, %109, %cst_37 [1] : vector<5x5xf32> to vector<5xf32>
    %111 = vector.shape_cast %110 : vector<5xf32> to vector<5x1xf32>
    %112 = vector.broadcast %111 : vector<5x1xf32> to vector<5x5xf32>
    %113 = arith.divf %109, %112 : vector<5x5xf32>
    %114 = arith.truncf %113 : vector<5x5xf32> to vector<5x5xbf16>
    %cst_38 = arith.constant dense<0.000000e+00> : vector<5x8xf32>
    %115 = tpu.matmul %114, %101, %cst_38 {dimension_numbers = #tpu.dot_dimension_numbers<[1], [0], [0], [1], [0, 0, 1, 1], [], []>} : vector<5x5xbf16>, vector<5x8xbf16>, vector<5x8xf32> -> vector<5x8xf32>
    %116 = tpu.concatenate %55, %75, %95, %115 in 1 : vector<5x8xf32>, vector<5x8xf32>, vector<5x8xf32>, vector<5x8xf32> -> vector<5x32xf32>
    %117 = arith.truncf %116 : vector<5x32xf32> to vector<5x32xbf16>
    %c0_39 = arith.constant 0 : index
    %c0_40 = arith.constant 0 : index
    %c0_41 = arith.constant 0 : index
    %118 = vector.load %arg11[%c0_39, %c0_40, %c0_41] : memref<1x32x32xbf16, #tpu.memory_space<vmem>>, vector<1x32x32xbf16>
    %119 = vector.shape_cast %118 : vector<1x32x32xbf16> to vector<32x32xbf16>
    %cst_42 = arith.constant dense<0.000000e+00> : vector<5x32xf32>
    %120 = tpu.matmul %117, %119, %cst_42 {dimension_numbers = #tpu.dot_dimension_numbers<[1], [0], [0], [1], [0, 0, 1, 1], [], []>} : vector<5x32xbf16>, vector<32x32xbf16>, vector<5x32xf32> -> vector<5x32xf32>
    %c0_43 = arith.constant 0 : index
    %c0_44 = arith.constant 0 : index
    %c0_45 = arith.constant 0 : index
    %121 = vector.load %arg12[%c0_43, %c0_44, %c0_45] : memref<1x1x32xf32, #tpu.memory_space<vmem>>, vector<1x1x32xf32>
    %122 = vector.shape_cast %121 : vector<1x1x32xf32> to vector<1x32xf32>
    %123 = vector.broadcast %122 : vector<1x32xf32> to vector<5x32xf32>
    %124 = arith.addf %120, %123 : vector<5x32xf32>
    %125 = arith.addf %3, %124 : vector<5x32xf32>
    %c0_46 = arith.constant 0 : index
    %c0_47 = arith.constant 0 : index
    %c0_48 = arith.constant 0 : index
    %126 = vector.load %arg13[%c0_46, %c0_47, %c0_48] : memref<1x1x32xf32, #tpu.memory_space<vmem>>, vector<1x1x32xf32>
    %127 = vector.shape_cast %126 : vector<1x1x32xf32> to vector<1x32xf32>
    %c0_49 = arith.constant 0 : index
    %c0_50 = arith.constant 0 : index
    %c0_51 = arith.constant 0 : index
    %128 = vector.load %arg14[%c0_49, %c0_50, %c0_51] : memref<1x1x32xf32, #tpu.memory_space<vmem>>, vector<1x1x32xf32>
    %129 = vector.shape_cast %128 : vector<1x1x32xf32> to vector<1x32xf32>
    %cst_52 = arith.constant dense<0.000000e+00> : vector<5xf32>
    %130 = vector.multi_reduction <add>, %125, %cst_52 [1] : vector<5x32xf32> to vector<5xf32>
    %131 = vector.shape_cast %130 : vector<5xf32> to vector<5x1xf32>
    %cst_53 = arith.constant 3.200000e+01 : f32
    %132 = vector.broadcast %cst_53 : f32 to vector<5x1xf32>
    %133 = arith.divf %131, %132 : vector<5x1xf32>
    %134 = vector.broadcast %133 : vector<5x1xf32> to vector<5x32xf32>
    %135 = arith.subf %125, %134 : vector<5x32xf32>
    %136 = arith.mulf %135, %135 : vector<5x32xf32>
    %cst_54 = arith.constant dense<0.000000e+00> : vector<5xf32>
    %137 = vector.multi_reduction <add>, %136, %cst_54 [1] : vector<5x32xf32> to vector<5xf32>
    %138 = vector.shape_cast %137 : vector<5xf32> to vector<5x1xf32>
    %cst_55 = arith.constant 3.200000e+01 : f32
    %139 = vector.broadcast %cst_55 : f32 to vector<5x1xf32>
    %140 = arith.divf %138, %139 : vector<5x1xf32>
    %cst_56 = arith.constant 9.99999997E-7 : f32
    %141 = vector.broadcast %cst_56 : f32 to vector<5x1xf32>
    %142 = arith.addf %140, %141 : vector<5x1xf32>
    %143 = math.rsqrt %142 : vector<5x1xf32>
    %144 = vector.broadcast %143 : vector<5x1xf32> to vector<5x32xf32>
    %145 = arith.mulf %135, %144 : vector<5x32xf32>
    %146 = vector.broadcast %127 : vector<1x32xf32> to vector<5x32xf32>
    %147 = arith.mulf %145, %146 : vector<5x32xf32>
    %148 = vector.broadcast %129 : vector<1x32xf32> to vector<5x32xf32>
    %149 = arith.addf %147, %148 : vector<5x32xf32>
    %150 = arith.truncf %149 : vector<5x32xf32> to vector<5x32xbf16>
    %c0_57 = arith.constant 0 : index
    %c0_58 = arith.constant 0 : index
    %c0_59 = arith.constant 0 : index
    %151 = vector.load %arg15[%c0_57, %c0_58, %c0_59] : memref<1x32x128xbf16, #tpu.memory_space<vmem>>, vector<1x32x128xbf16>
    %152 = vector.shape_cast %151 : vector<1x32x128xbf16> to vector<32x128xbf16>
    %cst_60 = arith.constant dense<0.000000e+00> : vector<5x128xf32>
    %153 = tpu.matmul %150, %152, %cst_60 {dimension_numbers = #tpu.dot_dimension_numbers<[1], [0], [0], [1], [0, 0, 1, 1], [], []>} : vector<5x32xbf16>, vector<32x128xbf16>, vector<5x128xf32> -> vector<5x128xf32>
    %c0_61 = arith.constant 0 : index
    %c0_62 = arith.constant 0 : index
    %c0_63 = arith.constant 0 : index
    %154 = vector.load %arg16[%c0_61, %c0_62, %c0_63] : memref<1x1x128xf32, #tpu.memory_space<vmem>>, vector<1x1x128xf32>
    %155 = vector.shape_cast %154 : vector<1x1x128xf32> to vector<1x128xf32>
    %156 = vector.broadcast %155 : vector<1x128xf32> to vector<5x128xf32>
    %157 = arith.addf %153, %156 : vector<5x128xf32>
    %158 = arith.mulf %157, %157 : vector<5x128xf32>
    %159 = arith.mulf %157, %158 : vector<5x128xf32>
    %cst_64 = arith.constant 4.471500e-02 : f32
    %160 = vector.broadcast %cst_64 : f32 to vector<5x128xf32>
    %161 = arith.mulf %160, %159 : vector<5x128xf32>
    %162 = arith.addf %157, %161 : vector<5x128xf32>
    %cst_65 = arith.constant 0.797884583 : f32
    %163 = vector.broadcast %cst_65 : f32 to vector<5x128xf32>
    %164 = arith.mulf %163, %162 : vector<5x128xf32>
    %165 = math.tanh %164 : vector<5x128xf32>
    %cst_66 = arith.constant 1.000000e+00 : f32
    %166 = vector.broadcast %cst_66 : f32 to vector<5x128xf32>
    %167 = arith.addf %166, %165 : vector<5x128xf32>
    %cst_67 = arith.constant 5.000000e-01 : f32
    %168 = vector.broadcast %cst_67 : f32 to vector<5x128xf32>
    %169 = arith.mulf %168, %167 : vector<5x128xf32>
    %170 = arith.mulf %157, %169 : vector<5x128xf32>
    %171 = arith.truncf %170 : vector<5x128xf32> to vector<5x128xbf16>
    %c0_68 = arith.constant 0 : index
    %c0_69 = arith.constant 0 : index
    %c0_70 = arith.constant 0 : index
    %172 = vector.load %arg17[%c0_68, %c0_69, %c0_70] : memref<1x128x32xbf16, #tpu.memory_space<vmem>>, vector<1x128x32xbf16>
    %173 = vector.shape_cast %172 : vector<1x128x32xbf16> to vector<128x32xbf16>
    %cst_71 = arith.constant dense<0.000000e+00> : vector<5x32xf32>
    %174 = tpu.matmul %171, %173, %cst_71 {dimension_numbers = #tpu.dot_dimension_numbers<[1], [0], [0], [1], [0, 0, 1, 1], [], []>} : vector<5x128xbf16>, vector<128x32xbf16>, vector<5x32xf32> -> vector<5x32xf32>
    %c0_72 = arith.constant 0 : index
    %c0_73 = arith.constant 0 : index
    %c0_74 = arith.constant 0 : index
    %175 = vector.load %arg18[%c0_72, %c0_73, %c0_74] : memref<1x1x32xf32, #tpu.memory_space<vmem>>, vector<1x1x32xf32>
    %176 = vector.shape_cast %175 : vector<1x1x32xf32> to vector<1x32xf32>
    %177 = vector.broadcast %176 : vector<1x32xf32> to vector<5x32xf32>
    %178 = arith.addf %174, %177 : vector<5x32xf32>
    %179 = arith.addf %125, %178 : vector<5x32xf32>
    %c0_75 = arith.constant 0 : index
    %c0_76 = arith.constant 0 : index
    %180 = vector.load %arg24[%c0_75, %c0_76] : memref<5x32xf32, #tpu.memory_space<vmem>>, vector<5x32xf32>
    tpu.vector_store %arg24[%c0_75, %c0_76], %179 {strides = array<i32>} : memref<5x32xf32, #tpu.memory_space<vmem>>, vector<5x32xf32>,
    %c1_i32 = arith.constant 1 : i32
    %181 = arith.cmpi eq, %arg1, %c1_i32 : i32
    %182 = arith.extui %181 : i1 to i32
    %c0_i32_77 = arith.constant 0 : i32
    %183 = arith.cmpi ne, %182, %c0_i32_77 : i32
    scf.if %183 {
      %184 = vector.extract_strided_slice %179 {offsets = [0, 0], sizes = [1, 32], strides = [1, 1]} : vector<5x32xf32> to vector<1x32xf32>
      %c0_78 = arith.constant 0 : index
      %c0_79 = arith.constant 0 : index
      %185 = vector.load %arg19[%c0_78, %c0_79] : memref<1x32xf32, #tpu.memory_space<vmem>>, vector<1x32xf32>
      %c0_80 = arith.constant 0 : index
      %c0_81 = arith.constant 0 : index
      %186 = vector.load %arg20[%c0_80, %c0_81] : memref<1x32xf32, #tpu.memory_space<vmem>>, vector<1x32xf32>
      %cst_82 = arith.constant dense<0.000000e+00> : vector<1xf32>
      %187 = vector.multi_reduction <add>, %184, %cst_82 [1] : vector<1x32xf32> to vector<1xf32>
      %188 = vector.shape_cast %187 : vector<1xf32> to vector<1x1xf32>
      %cst_83 = arith.constant 3.200000e+01 : f32
      %189 = vector.broadcast %cst_83 : f32 to vector<1x1xf32>
      %190 = arith.divf %188, %189 : vector<1x1xf32>
      %191 = vector.broadcast %190 : vector<1x1xf32> to vector<1x32xf32>
      %192 = arith.subf %184, %191 : vector<1x32xf32>
      %193 = arith.mulf %192, %192 : vector<1x32xf32>
      %cst_84 = arith.constant dense<0.000000e+00> : vector<1xf32>
      %194 = vector.multi_reduction <add>, %193, %cst_84 [1] : vector<1x32xf32> to vector<1xf32>
      %195 = vector.shape_cast %194 : vector<1xf32> to vector<1x1xf32>
      %cst_85 = arith.constant 3.200000e+01 : f32
      %196 = vector.broadcast %cst_85 : f32 to vector<1x1xf32>
      %197 = arith.divf %195, %196 : vector<1x1xf32>
      %cst_86 = arith.constant 9.99999997E-7 : f32
      %198 = vector.broadcast %cst_86 : f32 to vector<1x1xf32>
      %199 = arith.addf %197, %198 : vector<1x1xf32>
      %200 = math.rsqrt %199 : vector<1x1xf32>
      %201 = vector.broadcast %200 : vector<1x1xf32> to vector<1x32xf32>
      %202 = arith.mulf %192, %201 : vector<1x32xf32>
      %203 = arith.mulf %202, %185 : vector<1x32xf32>
      %204 = arith.addf %203, %186 : vector<1x32xf32>
      %205 = arith.truncf %204 : vector<1x32xf32> to vector<1x32xbf16>
      %c0_87 = arith.constant 0 : index
      %c0_88 = arith.constant 0 : index
      %206 = vector.load %arg21[%c0_87, %c0_88] : memref<32x10xbf16, #tpu.memory_space<vmem>>, vector<32x10xbf16>
      %cst_89 = arith.constant dense<0.000000e+00> : vector<1x10xf32>
      %207 = tpu.matmul %205, %206, %cst_89 {dimension_numbers = #tpu.dot_dimension_numbers<[1], [0], [0], [1], [0, 0, 1, 1], [], []>} : vector<1x32xbf16>, vector<32x10xbf16>, vector<1x10xf32> -> vector<1x10xf32>
      %c0_90 = arith.constant 0 : index
      %c0_91 = arith.constant 0 : index
      %208 = vector.load %arg22[%c0_90, %c0_91] : memref<1x10xf32, #tpu.memory_space<vmem>>, vector<1x10xf32>
      %209 = arith.addf %207, %208 : vector<1x10xf32>
      %c0_92 = arith.constant 0 : index
      %c0_93 = arith.constant 0 : index
      %c0_94 = arith.constant 0 : index
      %210 = vector.load %arg23[%c0_92, %c0_93, %c0_94] : memref<1x1x10xf32, #tpu.memory_space<vmem>>, vector<1x1x10xf32>
      %211 = vector.shape_cast %210 : vector<1x1x10xf32> to vector<1x10xf32>
      %212 = vector.shape_cast %209 : vector<1x10xf32> to vector<1x1x10xf32>
      tpu.vector_store %arg23[%c0_92, %c0_93, %c0_94], %212 {strides = array<i32>} : memref<1x1x10xf32, #tpu.memory_space<vmem>>, vector<1x1x10xf32>,
    } else {
    }
    return
  }
  func.func @transform_0(%arg0: i32, %arg1: i32) -> (i32, i32, i32) {
    %c0_i32 = arith.constant 0 : i32
    %c0_i32_0 = arith.constant 0 : i32
    %c0_i32_1 = arith.constant 0 : i32
    return %arg0, %c0_i32, %c0_i32_0 : i32, i32, i32
  }
  func.func @transform_1(%arg0: i32, %arg1: i32) -> (i32, i32) {
    %c0_i32 = arith.constant 0 : i32
    %c0_i32_0 = arith.constant 0 : i32
    %c0_i32_1 = arith.constant 0 : i32
    return %c0_i32, %c0_i32_0 : i32, i32
  }
  func.func @transform_2(%arg0: i32, %arg1: i32) -> (i32, i32) {
    %c0_i32 = arith.constant 0 : i32
    %c0_i32_0 = arith.constant 0 : i32
    %c0_i32_1 = arith.constant 0 : i32
    return %c0_i32, %c0_i32_0 : i32, i32
  }
  func.func @transform_3(%arg0: i32, %arg1: i32) -> (i32, i32) {
    %c0_i32 = arith.constant 0 : i32
    %c0_i32_0 = arith.constant 0 : i32
    %c0_i32_1 = arith.constant 0 : i32
    return %c0_i32, %c0_i32_0 : i32, i32
  }
  func.func @transform_4(%arg0: i32, %arg1: i32) -> (i32, i32, i32) {
    %c0_i32 = arith.constant 0 : i32
    %c0_i32_0 = arith.constant 0 : i32
    %c0_i32_1 = arith.constant 0 : i32
    %c0_i32_2 = arith.constant 0 : i32
    return %c0_i32, %c0_i32_0, %c0_i32_1 : i32, i32, i32
  }
  func.func @transform_5(%arg0: i32, %arg1: i32) -> (i32, i32, i32) {
    %c0_i32 = arith.constant 0 : i32
    %c0_i32_0 = arith.constant 0 : i32
    %c0_i32_1 = arith.constant 0 : i32
    return %arg1, %c0_i32, %c0_i32_0 : i32, i32, i32
  }
  func.func @transform_6(%arg0: i32, %arg1: i32) -> (i32, i32, i32) {
    %c0_i32 = arith.constant 0 : i32
    %c0_i32_0 = arith.constant 0 : i32
    %c0_i32_1 = arith.constant 0 : i32
    return %arg1, %c0_i32, %c0_i32_0 : i32, i32, i32
  }
  func.func @transform_7(%arg0: i32, %arg1: i32) -> (i32, i32, i32) {
    %c0_i32 = arith.constant 0 : i32
    %c0_i32_0 = arith.constant 0 : i32
    %c0_i32_1 = arith.constant 0 : i32
    return %arg1, %c0_i32, %c0_i32_0 : i32, i32, i32
  }
  func.func @transform_8(%arg0: i32, %arg1: i32) -> (i32, i32, i32) {
    %c0_i32 = arith.constant 0 : i32
    %c0_i32_0 = arith.constant 0 : i32
    %c0_i32_1 = arith.constant 0 : i32
    return %arg1, %c0_i32, %c0_i32_0 : i32, i32, i32
  }
  func.func @transform_9(%arg0: i32, %arg1: i32) -> (i32, i32, i32) {
    %c0_i32 = arith.constant 0 : i32
    %c0_i32_0 = arith.constant 0 : i32
    %c0_i32_1 = arith.constant 0 : i32
    return %arg1, %c0_i32, %c0_i32_0 : i32, i32, i32
  }
  func.func @transform_10(%arg0: i32, %arg1: i32) -> (i32, i32, i32) {
    %c0_i32 = arith.constant 0 : i32
    %c0_i32_0 = arith.constant 0 : i32
    %c0_i32_1 = arith.constant 0 : i32
    return %arg1, %c0_i32, %c0_i32_0 : i32, i32, i32
  }
  func.func @transform_11(%arg0: i32, %arg1: i32) -> (i32, i32, i32) {
    %c0_i32 = arith.constant 0 : i32
    %c0_i32_0 = arith.constant 0 : i32
    %c0_i32_1 = arith.constant 0 : i32
    return %arg1, %c0_i32, %c0_i32_0 : i32, i32, i32
  }
  func.func @transform_12(%arg0: i32, %arg1: i32) -> (i32, i32, i32) {
    %c0_i32 = arith.constant 0 : i32
    %c0_i32_0 = arith.constant 0 : i32
    %c0_i32_1 = arith.constant 0 : i32
    return %arg1, %c0_i32, %c0_i32_0 : i32, i32, i32
  }
  func.func @transform_13(%arg0: i32, %arg1: i32) -> (i32, i32, i32) {
    %c0_i32 = arith.constant 0 : i32
    %c0_i32_0 = arith.constant 0 : i32
    %c0_i32_1 = arith.constant 0 : i32
    return %arg1, %c0_i32, %c0_i32_0 : i32, i32, i32
  }
  func.func @transform_14(%arg0: i32, %arg1: i32) -> (i32, i32, i32) {
    %c0_i32 = arith.constant 0 : i32
    %c0_i32_0 = arith.constant 0 : i32
    %c0_i32_1 = arith.constant 0 : i32
    return %arg1, %c0_i32, %c0_i32_0 : i32, i32, i32
  }
  func.func @transform_15(%arg0: i32, %arg1: i32) -> (i32, i32, i32) {
    %c0_i32 = arith.constant 0 : i32
    %c0_i32_0 = arith.constant 0 : i32
    %c0_i32_1 = arith.constant 0 : i32
    return %arg1, %c0_i32, %c0_i32_0 : i32, i32, i32
  }
  func.func @transform_16(%arg0: i32, %arg1: i32) -> (i32, i32, i32) {
    %c0_i32 = arith.constant 0 : i32
    %c0_i32_0 = arith.constant 0 : i32
    %c0_i32_1 = arith.constant 0 : i32
    return %arg1, %c0_i32, %c0_i32_0 : i32, i32, i32
  }
  func.func @transform_17(%arg0: i32, %arg1: i32) -> (i32, i32) {
    %c0_i32 = arith.constant 0 : i32
    %c0_i32_0 = arith.constant 0 : i32
    %c0_i32_1 = arith.constant 0 : i32
    return %c0_i32, %c0_i32_0 : i32, i32
  }
  func.func @transform_18(%arg0: i32, %arg1: i32) -> (i32, i32) {
    %c0_i32 = arith.constant 0 : i32
    %c0_i32_0 = arith.constant 0 : i32
    %c0_i32_1 = arith.constant 0 : i32
    return %c0_i32, %c0_i32_0 : i32, i32
  }
  func.func @transform_19(%arg0: i32, %arg1: i32) -> (i32, i32) {
    %c0_i32 = arith.constant 0 : i32
    %c0_i32_0 = arith.constant 0 : i32
    %c0_i32_1 = arith.constant 0 : i32
    return %c0_i32, %c0_i32_0 : i32, i32
  }
  func.func @transform_20(%arg0: i32, %arg1: i32) -> (i32, i32) {
    %c0_i32 = arith.constant 0 : i32
    %c0_i32_0 = arith.constant 0 : i32
    %c0_i32_1 = arith.constant 0 : i32
    return %c0_i32, %c0_i32_0 : i32, i32
  }
  func.func @transform_21(%arg0: i32, %arg1: i32) -> (i32, i32, i32) {
    %c0_i32 = arith.constant 0 : i32
    %c0_i32_0 = arith.constant 0 : i32
    %c0_i32_1 = arith.constant 0 : i32
    return %arg0, %c0_i32, %c0_i32_0 : i32, i32, i32
  }
}

</mosaic_0001>

<bundles_post_ra>
// kernel: vitc_forward.1
= control target key start
LH: loop header
LB: loop body
LE: loop exit
PB: predicated region body
PF: predicated region fallthrough
CT: control target
= control target key end

     0   :  { %s3230_s0 = inlined_call_operand.vmem [shape: f32[2,4,256], index: 0, kind: input, shape index: {}]   ;;  %s3231_s1 = inlined_call_operand.vmem [shape: bf16[256,32], index: 1, kind: input, shape index: {}]   ;;  %s3232_s2 = inlined_call_operand.vmem [shape: f32[1,32], index: 2, kind: input, shape index: {}]   ;;  %s3233_s3 = inlined_call_operand.vmem [shape: f32[1,32], index: 3, kind: input, shape index: {}]   ;;  %s3234_s4 = inlined_call_operand.vmem [shape: f32[1,5,32], index: 4, kind: input, shape index: {}]   ;;  %s3235_s5 = inlined_call_operand.vmem [shape: f32[2,1,32], index: 5, kind: input, shape index: {}]   ;;  %s3236_s6 = inlined_call_operand.vmem [shape: f32[2,1,32], index: 6, kind: input, shape index: {}]   ;;  %s3237_s7 = inlined_call_operand.vmem [shape: bf16[2,32,96], index: 7, kind: input, shape index: {}]   ;;  %s3238_s8 = inlined_call_operand.vmem [shape: f32[2,1,96], index: 8, kind: input, shape index: {}]   ;;  %s3239_s9 = inlined_call_operand.vmem [shape: bf16[2,32,32], index: 9, kind: input, shape index: {}]   ;;  %s3240_s10 = inlined_call_operand.vmem [shape: f32[2,1,32], index: 10, kind: input, shape index: {}]   ;;  %s3241_s11 = inlined_call_operand.vmem [shape: f32[2,1,32], index: 11, kind: input, shape index: {}]   ;;  %s3242_s12 = inlined_call_operand.vmem [shape: f32[2,1,32], index: 12, kind: input, shape index: {}]   ;;  %s3243_s13 = inlined_call_operand.vmem [shape: bf16[2,32,128], index: 13, kind: input, shape index: {}]   ;;  %s3244_s14 = inlined_call_operand.vmem [shape: f32[2,1,128], index: 14, kind: input, shape index: {}]   ;;  %s3245_s15 = inlined_call_operand.vmem [shape: bf16[2,128,32], index: 15, kind: input, shape index: {}]   ;;  %s3246_s16 = inlined_call_operand.vmem [shape: f32[2,1,32], index: 16, kind: input, shape index: {}]   ;;  %s3247_s17 = inlined_call_operand.vmem [shape: f32[1,32], index: 17, kind: input, shape index: {}]   ;;  %s3248_s18 = inlined_call_operand.vmem [shape: f32[1,32], index: 18, kind: input, shape index: {}]   ;;  %s3249_s19 = inlined_call_operand.vmem [shape: bf16[32,10], index: 19, kind: input, shape index: {}]   ;;  %s3250_s20 = inlined_call_operand.vmem [shape: f32[1,10], index: 20, kind: input, shape index: {}]   ;;  %s3251_s21 = inlined_call_operand.hbm [shape: f32[2,1,10], index: 21, kind: output, shape index: {}]  }
   0x1   :  { %3267 = sst [smem:[#allocation18_spill]] %s3230_s0 }
   0x2   :  { %3268 = sst [smem:[#allocation19_spill]] %s3231_s1 }
   0x3   :  { %3269 = sst [smem:[#allocation20_spill]] %s3232_s2 }
   0x4   :  { %3270 = sst [smem:[#allocation21_spill]] %s3233_s3 }
   0x5   :  { %3271 = sst [smem:[#allocation22_spill]] %s3234_s4 }
   0x6   :  { %3272 = sst [smem:[#allocation23_spill]] %s3235_s5 }
   0x7   :  { %3273 = sst [smem:[#allocation24_spill]] %s3237_s7 }
   0x8   :  { %3274 = sst [smem:[#allocation25_spill]] %s3239_s9 }
   0x9   :  { %3275 = sst [smem:[#allocation26_spill]] %s3247_s17 }
   0xa   :  { %3276 = sst [smem:[#allocation27_spill]] %s3248_s18 }
   0xb   :  { %3277 = sst [smem:[#allocation28_spill]] %s3249_s19 }
   0xc   :  { %3278 = sst [smem:[#allocation29_spill]] %s3250_s20 }
   0xd   :  { %3279 = sst [smem:[#allocation30_spill]] %s3251_s21 }
   0xe   :  { %26 = vsyncpa [#allocation4], 0 }
   0xf   :  { %28 = vsyncpa [#allocation4 + $0x1], 0  ;;  %s2807_s2 = smov 0   ;;  %s2809_s25 = smov 0  }
  0x10   :  { %s2811_s26 = smov 0   ;;  %s2813_s27 = smov 0  }
  0x11   :  { %s2815_s3 = smov 0   ;;  %s2817_s28 = smov 0  }
  0x12   :  { %s2819_s29 = smov 0   ;;  %s2821_s0 = smov 0  }
  0x13 LB: > { %3280 = sst [smem:[#allocation6_spill]] %s2647_s2  ;;  %s2197_s4 = sadd.s32 4294967295, %s2675_s0   ;;  %s2675_s0 = sphi %s2821_s0, %s34_s0   ;;  %s2671_s29 = sphi %s2819_s29, %s3334_s29   ;;  %s2667_s28 = sphi %s2817_s28, %s3330_s28   ;;  %s2663_s3 = sphi %s2815_s3, %s3329_s3   ;;  %s2659_s27 = sphi %s2813_s27, %s3328_s27   ;;  %s2655_s26 = sphi %s2811_s26, %s3327_s26   ;;  %s2651_s25 = sphi %s2809_s25, %s3333_s25   ;;  %s2647_s2 = sphi %s2807_s2, %s3332_s2  }
  0x14   : > { %3281 = sst [smem:[#allocation7_spill]] %s2655_s26  ;;  %s2198_s30 = sadd.s32 4294967294, %s2675_s0  }
  0x15   : > { %3282 = sst [smem:[#allocation8_spill]] %s2659_s27  ;;  %s43_s5 = sadd.s32 1, %s2667_s28 }
  0x16   : > { %3283 = sst [smem:[#allocation9_spill]] %s2663_s3  ;;  %p44_p0 = scmp.ge.s32.totalorder %s43_s5, 2 }
  0x17   : > { %3284 = sst [smem:[#allocation10_spill]] %s2667_s28  ;;  %s46_s22 = sadd.s32 1, %s2671_s29 }
  0x18   : > { %3285 = sst [smem:[#allocation11_spill]] %s2671_s29  ;;  %p569_p1 = scmp.ne.s32.totalorder %s2655_s26, %s2651_s25 }
  0x19   : > { %3286 = sst [smem:[#allocation12_spill]] %s2675_s0  ;;  %p570_p2 = scmp.eq.s32.totalorder %s2197_s4, 3 }
  0x1a   : > { %s3336_s5 = smov (%p44_p0, %s43_s5), 0  ;;  %s3338_s22 = smov (!%p44_p0, %s46_s22), %s2671_s29 }
  0x1b   : > { %3287 = sst [smem:[#allocation13_spill]] %s3336_s5  ;;  %p2856_p3 = por %p570_p2, %p569_p1 }
  0x1c   : > { %p575_p4 = scmp.ne.s32.totalorder %s2651_s25, %s2647_s2  ;;  %p48_p5 = scmp.ge.s32.totalorder %s3338_s22, 2 }
  0x1d   : > { %s3288_s23 = scalar_select %p2856_p3, 1, 0 }
  0x1e   : > { %p576_p6 = scmp.eq.s32.totalorder %s2198_s30, 3  ;;  %p2201_p7 = scmp.ge.s32.totalorder %s2675_s0, 1 }
  0x1f   : > { %3289 = sst [smem:[#allocation14_spill]] %s3288_s23  ;;  %p706_p8 = scmp.lt.s32.totalorder %s2675_s0, 5 }
  0x20   : > { %s3340_s22 = smov (%p48_p5, %s3338_s22), 0  ;;  %p2866_p9 = por %p576_p6, %p575_p4 }
  0x21   : > { %3290 = sst [smem:[#allocation15_spill]] %s3340_s22  ;;  %p707_p10 = pnand %p2201_p7, %p706_p8 }
  0x22   : > { %s3291_s1 = scalar_select %p2866_p9, 1, 0 }
  0x23   : > { %s556_s24 = ssub.s32 %s2671_s29, %s3340_s22  ;;  %s559_s4 = sadd.s32 1, %s2655_s26 }
  0x24   : > { %3292 = sst [smem:[#allocation16_spill]] %s3291_s1  ;;  %p557_p11 = scmp.eq.s32.totalorder %s556_s24, 0 }
  0x25   : > { %710 = sbr.rel (%p707_p10) target bundleno = 3449 (0xd79), region = 104  ;;  %p809_p12 = scmp.lt.s32.totalorder (!%p707_p10), %s2663_s3, 1 }
  0x26   : > { %s2874_s5 = scalar_select %p557_p11, %s2655_s26, %s559_s4  }
  0x27   : > { %p814_p13 = scmp.lt.s32.totalorder (!%p707_p10), %s2659_s27, 1  ;;  %s3294_s29 = sld [smem:[#allocation18_spill]] (!%p707_p10) }
  0x28   : > { %3293 = sst [smem:[#allocation17_spill]] %s2874_s5  ;;  %s3296_s7 = sld [smem:[#allocation24_spill]] (!%p707_p10) }
  0x29   : > { %s3297_s9 = sld [smem:[#allocation25_spill]] (!%p707_p10)  ;;  %s3298_s17 = sand.u32 (!%p707_p10), 1, %s2651_s25  }
  0x2a   : > { %s2944_s18 = scalar_lea.vmem (!%p707_p10), [#allocation3], %s3298_s17 }
  0x2c   : > { %s810_s28 = scalar_select %p809_p12, %s2663_s3, 1 }
  0x2d   : > { %s2881_s2 = scalar_select %p814_p13, %s2659_s27, 1 }
  0x2e   : > { %s2270_s24 = sshll.u32 %s810_s28, 3 }
  0x2f   : > { %s2886_s30 = scalar_lea.vmem %s3294_s29, %s2270_s24  ;;  %s2271_s20 = sshll.u32 %s2881_s2, 4 }
  0x30   : > { %s2900_s19 = scalar_lea.vmem %s3296_s7, %s2271_s20  ;;  %s2909_s4 = scalar_lea.vmem %s3297_s9, %s2271_s20 }
  0x31   : > { %s2926_s28 = scalar_lea.vmem %s3243_s13, %s2271_s20  ;;  %s2274_s9 = sshll.u32 %s2881_s2, 6 }
  0x32   : > { %s857_s21 = scalar_lea.vmem %s3246_s16, %s2881_s2  ;;  %s2940_s3 = scalar_lea.vmem %s3245_s15, %s2274_s9 }
  0x33   : > { %s3299_s7 = sld [smem:[#allocation8_spill]] }
  0x39   : > { %p2212_p0 = scmp.ne.s32.totalorder %s3299_s7, 0 }
  0x3a   : > { %s3300_s29 = sld [smem:[#allocation19_spill]] (!%p2212_p0)  ;;  %v863_v11 = vld [vmem:[%s2886_s30] sm:$0xff] (!%p2212_p0)  ;;  %s3302_s17 = sld [smem:[#allocation22_spill]] (!%p2212_p0)  ;;  %vm1054_vm0 = vcmask (!%p2212_p0), 1040384   ;;  %vm1056_vm1 = vcmask (!%p2212_p0), 258048  }
  0x3b   : > { %862 = sbr.rel (%p2212_p0) target bundleno = 320 (0x140), region = 108  ;;  %v865_v12 = vcombine.high (!%p2212_p0), %v863_v11, %v863_v11  ;;  %v867_v19 = vpack.c.bf16 (!%p2212_p0), %v863_v11, %v863_v11  ;;  %s3303_s22 = sld [smem:[#allocation20_spill]] (!%p2212_p0) }
  0x3d   : > { %v868_v14 = vpack.c.bf16 (!%p2212_p0), %v865_v12, %v865_v12 }
  0x3f   : > { %1036 = vmatprep.mubr.bf16.mxu0 (!%p2212_p0), %v868_v14 }
  0x40   : > { %s3301_s24 = smov (!%p2212_p0), %s3300_s29  ;;  %v2524_v0 = vld [vmem:[%s3300_s29 + $0x40] sm:$0xff] (!%p2212_p0)   ;;  %s3304_s29 = sld [smem:[#allocation21_spill]] (!%p2212_p0) }
  0x41   : > { %v2525_v1 = vld [vmem:[%s3301_s24] sm:$0xff] (!%p2212_p0)   ;;  %2275 = vmatprep.subr.bf16.mxu0 (!%p2212_p0), %v2524_v0  ;;  %v2526_v2 = vld [vmem:[%s3301_s24 + $0x48] sm:$0xff] (!%p2212_p0)   ;;  %v2528_v4 = vld [vmem:[%s3301_s24 + $0x50] sm:$0xff] (!%p2212_p0)  }
  0x42   : > { %2276 = vmatpush3.bf16.msra.mxu0 %v2525_v1  ;;  %v2527_v3 = vld [vmem:[%s3301_s24 + $0x8] sm:$0xff]   ;;  %v2529_v5 = vld [vmem:[%s3301_s24 + $0x10] sm:$0xff]   ;;  %v2530_v6 = vld [vmem:[%s3301_s24 + $0x58] sm:$0xff]  }
  0x43   : > { %2277 = vmatprep.subr.bf16.mxu0 %v2526_v2  ;;  %v2531_v7 = vld [vmem:[%s3301_s24 + $0x18] sm:$0xff]   ;;  %v2532_v8 = vld [vmem:[%s3301_s24 + $0x60] sm:$0xff]   ;;  %v2534_v10 = vld [vmem:[%s3301_s24 + $0x68] sm:$0xff]  }
  0x44   : > { %v2533_v9 = vld [vmem:[%s3301_s24 + $0x20] sm:$0xff]   ;;  %v2535_v13 = vld [vmem:[%s3301_s24 + $0x28] sm:$0xff]   ;;  %v2536_v15 = vld [vmem:[%s3301_s24 + $0x70] sm:$0xff]  }
  0x45   : > { %v2537_v16 = vld [vmem:[%s3301_s24 + $0x30] sm:$0xff]   ;;  %v2538_v17 = vld [vmem:[%s3301_s24 + $0x78] sm:$0xff]   ;;  %v1044_v20 = vld [vmem:[%s3302_s17] sm:$0x1f] }
  0x46   : > { %2278 = vmatpush3.bf16.msra.mxu0 %v2527_v3  ;;  %v2539_v18 = vld [vmem:[%s3301_s24 + $0x38] sm:$0xff]   ;;  %v2213_v22 = vld [vmem:[%s3303_s22] ss:$0 sm:$0xff]  ;;  %v1048_v25 = vrot.slane %v1044_v20, 1 }
  0x47   : > { %2279 = vmatprep.subr.bf16.mxu0 %v2528_v4  ;;  %v1045_v27 = vld [vmem:[%s3304_s29] sm:$0x1] }
  0x48   : > { %v1046_v30 = vadd.f32 %v1045_v27, %v1044_v20 }
  0x4a   : > { %2280 = vmatpush3.bf16.msra.mxu0 %v2529_v5 }
  0x4b   : > { %2281 = vmatprep.subr.bf16.mxu0 %v2530_v6 }
  0x4e   : > { %2282 = vmatpush3.bf16.msra.mxu0 %v2531_v7 }
  0x4f   : > { %2283 = vmatprep.subr.bf16.mxu0 %v2532_v8 }
  0x52   : > { %2284 = vmatpush3.bf16.msra.mxu0 %v2533_v9 }
  0x53   : > { %2285 = vmatprep.subr.bf16.mxu0 %v2534_v10 }
  0x56   : > { %2286 = vmatpush3.bf16.msra.mxu0 %v2535_v13 }
  0x57   : > { %2287 = vmatprep.subr.bf16.mxu0 %v2536_v15 }
  0x5a   : > { %2288 = vmatpush3.bf16.msra.mxu0 %v2537_v16 }
  0x5b   : > { %2289 = vmatprep.subr.bf16.mxu0 %v2538_v17 }
  0x5e   : > { %2290 = vmatpush3.bf16.msra.mxu0 %v2539_v18 }
  0x61   : > { %1037 = vmatmul.mubr.bf16.vlgmr.msra.gmra.mrb[0].mxu0 %v867_v19 }
 0x134   : > { %v2291_v21 = vpop.f32.mrb[0].mxu0 }
 0x135   : > { %v2292_v23 = vpop.f32.mrb[1].mxu0 }
 0x136   : > { %v2293_v24 = vadd.f32 %v2292_v23, %v2291_v21  ;;  %v2294_v26 = vpop.f32.mrb[2].mxu0 }
 0x137   : > { %v2295_v28 = vpop.f32.mrb[3].mxu0 }
 0x138   : > { %v1039_v29 = vadd.f32 %v2293_v24, %v2213_v22 }
 0x13a   : > { %v1050_v31 = vadd.f32 %v1048_v25, %v1039_v29 }
 0x13c   : > { %v1052_v32 = vrot.slane %v1050_v31, 7 }
 0x13e   : > { %v1055_v33 = vsel %vm1054_vm0, %v1046_v30, %v1052_v32 }
 0x13f   : > { %1057 = vst.msk [vmem:[#allocation2] sm:$0x1f] %vm1056_vm1, %v1055_v33 }
 0x140 PF: > { %vm1061_vm2 = vcmask 258048   ;;  %v2541_v41 = vld [vmem:[%s2900_s19] sm:$0xff]   ;;  %v2677_v42 = vmov 0.0   ;;  %vm2678_vm3 = vmmov 0   ;;  %v2542_v43 = vld [vmem:[%s2900_s19 + $0x8] sm:$0xff]   ;;  %s3305_s5 = sld [smem:[#allocation23_spill]]  ;;  %s3307_s1 = scalar_lea.vmem %s3236_s6, %s2881_s2 }
 0x141   : > { %2334 = vmatprep.subr.bf16.mxu0 %v2677_v42  ;;  %2338 = vmatprep.mubr.msk.bf16.mxu0 %vm2678_vm3, %v2677_v42  ;;  %v2231_v50 = vld [vmem:[%s3307_s1] ss:$0 sm:$0xff]  ;;  %vm1114_vm4 = vcmask 261120   ;;  %s3308_s0 = scalar_lea.vmem %s3238_s8, %s2881_s2  ;;  %s2679_s22 = smov 120   ;;  %vm1162_vm5 = vcmask 64512   ;;  %vm1210_vm6 = vcmask 36864  }
 0x142   : > { %2335 = vmatpush3.bf16.msra.mxu0 %v2541_v41  ;;  %2354 = vmatprep.subr.bf16.mxu1 %v2677_v42  ;;  %v2232_v54 = vld [vmem:[%s3308_s0] ss:$0 sm:$0xff]  ;;  %s2680_s20 = smov 96   ;;  %s2681_s27 = smov 88   ;;  %vm1229_vm7 = vcmask 1041408   ;;  %vm1230_vm8 = vcmask 1042432  }
 0x143   : > { %2336 = vmatprep.subr.bf16.mxu0 %v2677_v42  ;;  %2356 = vmatprep.mubr.msk.bf16.mxu1 %vm2678_vm3, %v2677_v42  ;;  %s2682_s29 = smov 80   ;;  %s2683_s30 = smov 112   ;;  %vm1225_vm9 = vcmask 39936   ;;  %vm1622_vm10 = vcmask 130048   ;;  %vm1624_vm11 = vcmask 195584  }
 0x144   : > { %s2684_s26 = smov 72   ;;  %s2687_s9 = smov 64  }
 0x145   : > { %s2688_s23 = smov 48   ;;  %s2689_s1 = smov 40  }
 0x146   : > { %v3005_v34 = vld [vmem:[#allocation2] sm:$0x1f]  ;;  %2337 = vmatpush3.bf16.msra.mxu0 %v2542_v43  ;;  %s3306_s19 = scalar_lea.vmem %s3305_s5, %s2881_s2  ;;  %s2685_s5 = smov 104  }
 0x147   : > { %v1062_v35 = vsel %vm1061_vm2, %v3005_v34, 0.0  ;;  %2342 = vmatprep.subr.bf16.mxu0 %v2677_v42  ;;  %v2230_v48 = vld [vmem:[%s3306_s19] ss:$0 sm:$0xff]  ;;  %s2686_s19 = smov 56   ;;  %s2691_s17 = smov 8  }
 0x148   : > { %1063 = vadd.xlane.f32.xlu0 %v1062_v35  ;;  %s2692_s7 = smov 16   ;;  %s2693_s0 = smov 24  }
 0x1d5   : > { %v1064_v36 = vpop.xlane.xlu0 %1063 }
 0x1d6   : > { %v1066_v37 = vmul.f32 0.03125, %v1064_v36 }
 0x1d8   : > { %v1067_v38 = vsub.f32 %v3005_v34, %v1066_v37 }
 0x1da   : > { %v1068_v39 = vmul.f32 %v1067_v38, %v1067_v38 }
 0x1dc   : > { %v1069_v40 = vsel %vm1061_vm2, %v1068_v39, 0.0 }
 0x1dd   : > { %1070 = vadd.xlane.f32.xlu0 %v1069_v40 }
 0x26a   : > { %v1071_v44 = vpop.xlane.xlu0 %1070 }
 0x26b   : > { %v1072_v45 = vmul.f32 0.03125, %v1071_v44 }
 0x26d   : > { %v1073_v46 = vadd.f32 1e-06, %v1072_v45 }
 0x26f   : > { %2555 = vrsqrt.f32 %v1073_v46 }
 0x279   : > { %v2556_v47 = vpop.eup %2555 }
 0x27a   : > { %v1075_v49 = vmul.f32 %v2556_v47, %v1067_v38 }
 0x27c   : > { %v1082_v51 = vmul.f32 %v2230_v48, %v1075_v49 }
 0x27e   : > { %v1089_v52 = vadd.f32 %v2231_v50, %v1082_v51 }
 0x280   : > { %v1090_v53 = vpack.c.bf16 %v1089_v52, %v1089_v52 }
 0x282   : > { %2339 = vmatmul.mubr.msk.bf16.vlgmr.msra.gmra.mrb[0].mxu0 %vm1114_vm4, %v1090_v53 }
 0x283   : > { %2344 = vmatprep.mubr.msk.bf16.mxu0 %vm2678_vm3, %v2677_v42 }
 0x355   : > { %v1152_v55 = vpop.f32.mrb[0].mxu0 }
 0x356   : > { %v1153_v56 = vadd.f32 %v2232_v54, %v1152_v55  ;;  %v2340_v57 = vpop.f32.mrb[1].mxu0 }
 0x357   : > { %v1155_v58 = vpop.f32.mrb[2].mxu0 }
 0x358   : > { %v3039_v59 = vpack.c.bf16 %v1153_v56, %v1153_v56  ;;  %v2341_v60 = vpop.f32.mrb[3].mxu0  ;;  %v2690_v56 = vmov 65535  }
 0x359   : > { %v1231_v57 = vsel %vm1229_vm7, 4294967295, %v2690_v56 }
 0x35a   : > { %1276 = vrot.lane.b32.xlu0 %v3039_v59, %s2679_s22  ;;  %1160 = vrot.lane.b32.xlu1 %v3039_v59, %s2680_s20  ;;  %v1232_v58 = vsel %vm1230_vm8, %v1231_v57, 0  ;;  %s3309_s20 = scalar_lea.vmem %s3240_s10, %s2881_s2  ;;  %v2545_v57 = vld [vmem:[%s2926_s28] sm:$0xff]  }
 0x35e   : > { %1278 = vrot.lane.b32.xlu1 %v3039_v59, %s2681_s27 }
 0x362   : > { %1389 = vrot.lane.b32.xlu1 %v3039_v59, %s2682_s29 }
 0x366   : > { %1387 = vrot.lane.b32.xlu1 %v3039_v59, %s2683_s30  ;;  %s3310_s30 = scalar_lea.vmem %s3241_s11, %s2881_s2 }
 0x36a   : > { %1500 = vrot.lane.b32.xlu1 %v3039_v59, %s2684_s26 }
 0x36e   : > { %1498 = vrot.lane.b32.xlu1 %v3039_v59, %s2685_s5 }
 0x3cc   : > { %v1161_v61 = vpop.permute.xlu1 %1160  ;;  %v1277_v2 = vpop.permute.xlu0 %1276 }
 0x3cd   : > { %v1167_v62 = vsel %vm1162_vm5, %v1161_v61, 0 }
 0x3ce   : > { %2343 = vmatpush3.bf16.xpose.msra.mxu0 %v1167_v62 }
 0x3cf   : > { %2348 = vmatprep.subr.bf16.mxu0 %v2677_v42 }
 0x3d0   : > { %v1279_v63 = vpop.permute.xlu1 %1278 }
 0x3d1   : > { %v1284_v0 = vsel %vm1162_vm5, %v1279_v63, 0 }
 0x3d2   : > { %2355 = vmatpush3.bf16.xpose.msra.mxu1 %v1284_v0 }
 0x3d3   : > { %2366 = vmatprep.subr.bf16.mxu1 %v2677_v42 }
 0x3d4   : > { %v1390_v1 = vpop.permute.xlu1 %1389 }
 0x3d5   : > { %2345 = vmatmul.mubr.msk.bf16.vlgmr.msra.gmra.mrb[4].mxu0 %vm1162_vm5, %v3039_v59  ;;  %v1395_v4 = vsel %vm1162_vm5, %v1390_v1, 0 }
 0x3d6   : > { %2350 = vmatprep.mubr.msk.bf16.mxu0 %vm2678_vm3, %v2677_v42 }
 0x3d8   : > { %v1388_v3 = vpop.permute.xlu1 %1387 }
 0x3d9   : > { %2357 = vmatmul.mubr.msk.bf16.vlgmr.msra.gmra.mrb[0].mxu1 %vm1162_vm5, %v1277_v2 }
 0x3da   : > { %2367 = vmatpush3.bf16.xpose.msra.mxu1 %v1395_v4  ;;  %2368 = vmatprep.mubr.msk.bf16.mxu1 %vm2678_vm3, %v2677_v42 }
 0x3db   : > { %2378 = vmatprep.subr.bf16.mxu1 %v2677_v42 }
 0x3dc   : > { %v1501_v5 = vpop.permute.xlu1 %1500 }
 0x3dd   : > { %v1506_v6 = vsel %vm1162_vm5, %v1501_v5, 0 }
 0x3e0   : > { %v1499_v7 = vpop.permute.xlu1 %1498 }
 0x3e1   : > { %2369 = vmatmul.mubr.msk.bf16.vlgmr.msra.gmra.mrb[4].mxu1 %vm1162_vm5, %v1388_v3 }
 0x3e2   : > { %2379 = vmatpush3.bf16.xpose.msra.mxu1 %v1506_v6  ;;  %2380 = vmatprep.mubr.msk.bf16.mxu1 %vm2678_vm3, %v2677_v42 }
 0x3e3   : > { %2390 = vmatprep.subr.bf16.mxu1 %v2677_v42 }
 0x3e9   : > { %2381 = vmatmul.mubr.msk.bf16.vlgmr.msra.gmra.mrb[8].mxu1 %vm1162_vm5, %v1499_v7 }
 0x3ea   : > { %2394 = vmatprep.mubr.msk.bf16.mxu1 %vm2678_vm3, %v2677_v42 }
 0x4a8   : > { %v1203_v8 = vpop.f32.mrb[4].mxu0 }
 0x4a9   : > { %v1209_v9 = vmul.f32 0.35355338, %v1203_v8  ;;  %v2346_v10 = vpop.f32.mrb[5].mxu0 }
 0x4aa   : > { %v1206_v11 = vpop.f32.mrb[6].mxu0 }
 0x4ab   : > { %v2347_v12 = vpop.f32.mrb[7].mxu0  ;;  %v1211_v13 = vsel %vm1210_vm6, %v1209_v9, -inf }
 0x4ac   : > { %v1320_v14 = vpop.f32.mrb[0].mxu1  ;;  %1212 = vmax.xlane.f32.xlu1 %v1211_v13 }
 0x4ad   : > { %v1326_v15 = vmul.f32 0.35355338, %v1320_v14  ;;  %v2358_v16 = vpop.f32.mrb[1].mxu1 }
 0x4ae   : > { %v1323_v17 = vpop.f32.mrb[2].mxu1 }
 0x4af   : > { %v2359_v18 = vpop.f32.mrb[3].mxu1  ;;  %v1327_v19 = vsel %vm1210_vm6, %v1326_v15, -inf }
 0x4b0   : > { %1328 = vmax.xlane.f32.xlu0 %v1327_v19 }
 0x4b4   : > { %v1431_v20 = vpop.f32.mrb[4].mxu1 }
 0x4b5   : > { %v1437_v21 = vmul.f32 0.35355338, %v1431_v20  ;;  %v2370_v22 = vpop.f32.mrb[5].mxu1 }
 0x4b6   : > { %v1434_v23 = vpop.f32.mrb[6].mxu1 }
 0x4b7   : > { %v2371_v24 = vpop.f32.mrb[7].mxu1  ;;  %v1438_v25 = vsel %vm1210_vm6, %v1437_v21, -inf }
 0x4b8   : > { %1439 = vmax.xlane.f32.xlu1 %v1438_v25  ;;  %v2543_v25 = vld [vmem:[%s2909_s4] sm:$0xff]  }
 0x4b9   : > { %2391 = vmatpush3.bf16.msra.mxu1 %v2543_v25 }
 0x4ba   : > { %2392 = vmatprep.subr.bf16.mxu1 %v2677_v42 }
 0x4bc   : > { %v1542_v26 = vpop.f32.mrb[8].mxu1 }
 0x4bd   : > { %v1548_v27 = vmul.f32 0.35355338, %v1542_v26  ;;  %v2382_v28 = vpop.f32.mrb[9].mxu1  ;;  %v2544_v26 = vld [vmem:[%s2909_s4 + $0x8] sm:$0xff]  }
 0x4be   : > { %v1545_v29 = vpop.f32.mrb[10].mxu1  ;;  %2393 = vmatpush3.bf16.msra.mxu1 %v2544_v26 }
 0x4bf   : > { %v2383_v30 = vpop.f32.mrb[11].mxu1  ;;  %v1549_v31 = vsel %vm1210_vm6, %v1548_v27, -inf  ;;  %2406 = vmatprep.subr.bf16.mxu1 %v2677_v42 }
 0x4c0   : > { %1550 = vmax.xlane.f32.xlu0 %v1549_v31 }
 0x539   : > { %v1213_v32 = vpop.xlane.xlu1 %1212 }
 0x53a   : > { %v1214_v33 = vsub.f32 %v1209_v9, %v1213_v32 }
 0x53c   : > { %v1215_v35 = vmul.f32 1.442695, %v1214_v33 }
 0x53d   : > { %v1329_v36 = vpop.xlane.xlu0 %1328 }
 0x53e   : > { %2557 = vpow2.f32 %v1215_v35  ;;  %v1330_v37 = vsub.f32 %v1326_v15, %v1329_v36 }
 0x540   : > { %v1331_v38 = vmul.f32 1.442695, %v1330_v37 }
 0x542   : > { %2559 = vpow2.f32 %v1331_v38 }
 0x545   : > { %v1440_v44 = vpop.xlane.xlu1 %1439 }
 0x546   : > { %v1441_v45 = vsub.f32 %v1437_v21, %v1440_v44  ;;  %v2244_v44 = vld [vmem:[%s3309_s20] ss:$0 sm:$0xff] }
 0x548   : > { %v2558_v39 = vpop.eup %2557  ;;  %v1442_v47 = vmul.f32 1.442695, %v1441_v45 }
 0x549   : > { %v1217_v40 = vsel %vm1210_vm6, %v2558_v39, 0.0 }
 0x54a   : > { %1218 = vadd.xlane.f32.xlu1 %v1217_v40  ;;  %2561 = vpow2.f32 %v1442_v47 }
 0x54c   : > { %v2560_v41 = vpop.eup %2559 }
 0x54d   : > { %v1333_v43 = vsel %vm1210_vm6, %v2560_v41, 0.0  ;;  %v1551_v46 = vpop.xlane.xlu0 %1550 }
 0x54e   : > { %1334 = vadd.xlane.f32.xlu0 %v1333_v43  ;;  %v1552_v48 = vsub.f32 %v1548_v27, %v1551_v46 }
 0x550   : > { %v1553_v49 = vmul.f32 1.442695, %v1552_v48 }
 0x552   : > { %2563 = vpow2.f32 %v1553_v49 }
 0x554   : > { %v2562_v50 = vpop.eup %2561 }
 0x555   : > { %v1444_v51 = vsel %vm1210_vm6, %v2562_v50, 0.0 }
 0x55b   : > { %1339 = vrot.lane.b32.xlu1 %v3039_v59, %s2686_s19 }
 0x55c   : > { %v2564_v52 = vpop.eup %2563 }
 0x55d   : > { %v1555_v53 = vsel %vm1210_vm6, %v2564_v52, 0.0 }
 0x564   : > { %1223 = vrot.lane.b32.xlu0 %v3039_v59, %s2687_s9 }
 0x568   : > { %1450 = vrot.lane.b32.xlu0 %v3039_v59, %s2688_s23  ;;  %s3312_s23 = scalar_lea.vmem %s3244_s14, %s2881_s2 }
 0x57f   : > { %1445 = vadd.xlane.f32.xlu1 %v1444_v51 }
 0x583   : > { %1556 = vadd.xlane.f32.xlu1 %v1555_v53 }
 0x594   : > { %1561 = vrot.lane.b32.xlu1 %v3039_v59, %s2689_s1 }
 0x5d7   : > { %v1219_v54 = vpop.xlane.xlu1 %1218 }
 0x5d8   : > { %2565 = vrcp.f32 %v1219_v54 }
 0x5db   : > { %v1335_v55 = vpop.xlane.xlu0 %1334  ;;  %v1340_v0 = vpop.permute.xlu1 %1339 }
 0x5dc   : > { %2567 = vrcp.f32 %v1335_v55  ;;  %v1345_v2 = vand.u32 %v1340_v0, %v1232_v58 }
 0x5df   : > { %v1224_v60 = vpop.permute.xlu0 %1223 }
 0x5e0   : > { %v1234_v61 = vand.u32 %v1232_v58, %v1224_v60 }
 0x5e2   : > { %v2566_v62 = vpop.eup %2565  ;;  %2349 = vmatpush3.bf16.msra.mxu0 %v1234_v61 }
 0x5e3   : > { %v1221_v63 = vmul.f32 %v2566_v62, %v2558_v39  ;;  %2360 = vmatprep.subr.bf16.mxu0 %v2677_v42  ;;  %v1451_v4 = vpop.permute.xlu0 %1450 }
 0x5e4   : > { %v1456_v6 = vand.u32 %v1451_v4, %v1232_v58  ;;  %v2547_v4 = vld [vmem:[%s2940_s3] sm:$0xff]  }
 0x5e5   : > { %v1222_v1 = vpack.c.bf16 %v1221_v63, %v1221_v63  ;;  %v2248_v63 = vld [vmem:[%s3310_s30] ss:$0 sm:$0xff] }
 0x5e6   : > { %v2568_v59 = vpop.eup %2567 }
 0x5e7   : > { %2351 = vmatmul.mubr.msk.bf16.vlgmr.msra.gmra.mrb[8].mxu0 %vm1225_vm9, %v1222_v1  ;;  %v1337_v3 = vmul.f32 %v2568_v59, %v2560_v41 }
 0x5e8   : > { %2361 = vmatpush3.bf16.msra.mxu0 %v1345_v2  ;;  %2362 = vmatprep.mubr.msk.bf16.mxu0 %vm2678_vm3, %v2677_v42 }
 0x5e9   : > { %2372 = vmatprep.subr.bf16.mxu0 %v2677_v42  ;;  %v1338_v5 = vpack.c.bf16 %v1337_v3, %v1337_v3 }
 0x5ef   : > { %2363 = vmatmul.mubr.msk.bf16.vlgmr.msra.gmra.mrb[12].mxu0 %vm1225_vm9, %v1338_v5  ;;  %v2548_v5 = vld [vmem:[%s2940_s3 + $0x8] sm:$0xff]  }
 0x5f0   : > { %2373 = vmatpush3.bf16.msra.mxu0 %v1456_v6  ;;  %2374 = vmatprep.mubr.msk.bf16.mxu0 %vm2678_vm3, %v2677_v42  ;;  %v2549_v6 = vld [vmem:[%s2940_s3 + $0x10] sm:$0xff]  }
 0x5f1   : > { %2384 = vmatprep.subr.bf16.mxu0 %v2677_v42 }
 0x60c   : > { %v1446_v7 = vpop.xlane.xlu1 %1445 }
 0x60d   : > { %2569 = vrcp.f32 %v1446_v7  ;;  %v2550_v7 = vld [vmem:[%s2940_s3 + $0x18] sm:$0xff]  }
 0x610   : > { %v1557_v8 = vpop.xlane.xlu1 %1556 }
 0x611   : > { %2571 = vrcp.f32 %v1557_v8  ;;  %v2551_v8 = vld [vmem:[%s2940_s3 + $0x20] sm:$0xff]  }
 0x614   : > { %v1562_v11 = vpop.permute.xlu1 %1561 }
 0x615   : > { %v1567_v14 = vand.u32 %v1562_v11, %v1232_v58  ;;  %v2554_v11 = vld [vmem:[%s2940_s3 + $0x38] sm:$0xff]  }
 0x617   : > { %v2570_v9 = vpop.eup %2569 }
 0x618   : > { %v1448_v10 = vmul.f32 %v2570_v9, %v2562_v50  ;;  %v2552_v9 = vld [vmem:[%s2940_s3 + $0x28] sm:$0xff]  }
 0x61a   : > { %v1449_v12 = vpack.c.bf16 %v1448_v10, %v1448_v10  ;;  %v2553_v10 = vld [vmem:[%s2940_s3 + $0x30] sm:$0xff]  }
 0x61b   : > { %v2572_v13 = vpop.eup %2571 }
 0x61c   : > { %2375 = vmatmul.mubr.msk.bf16.vlgmr.msra.gmra.mrb[16].mxu0 %vm1225_vm9, %v1449_v12  ;;  %v1559_v15 = vmul.f32 %v2572_v13, %v2564_v52  ;;  %v2250_v12 = vld [vmem:[%s3312_s23] ss:$0 sm:$0xff] }
 0x61d   : > { %2385 = vmatpush3.bf16.msra.mxu0 %v1567_v14  ;;  %2386 = vmatprep.mubr.msk.bf16.mxu0 %vm2678_vm3, %v2677_v42 }
 0x61e   : > { %2398 = vmatprep.subr.bf16.mxu0 %v2677_v42  ;;  %v1560_v16 = vpack.c.bf16 %v1559_v15, %v1559_v15 }
 0x624   : > { %2387 = vmatmul.mubr.msk.bf16.vlgmr.msra.gmra.mrb[20].mxu0 %vm1225_vm9, %v1560_v16 }
 0x625   : > { %2402 = vmatprep.mubr.msk.bf16.mxu0 %vm2678_vm3, %v2677_v42  ;;  %2399 = vmatpush3.bf16.msra.mxu0 %v2545_v57 }
 0x626   : > { %2400 = vmatprep.subr.bf16.mxu0 %v2677_v42 }
 0x6ba   : > { %v1270_v17 = vpop.f32.mrb[8].mxu0 }
 0x6bb   : > { %v2352_v18 = vpop.f32.mrb[9].mxu0 }
 0x6bc   : > { %v1273_v19 = vpop.f32.mrb[10].mxu0 }
 0x6bd   : > { %v2353_v20 = vpop.f32.mrb[11].mxu0 }
 0x6c2   : > { %v1381_v21 = vpop.f32.mrb[12].mxu0 }
 0x6c3   : > { %1610 = vrot.lane.b32.xlu0 %v1381_v21, %s2691_s17  ;;  %v2364_v22 = vpop.f32.mrb[13].mxu0  ;;  %s3313_s17 = sld [smem:[#allocation8_spill]] }
 0x6c4   : > { %v1384_v23 = vpop.f32.mrb[14].mxu0 }
 0x6c5   : > { %v2365_v24 = vpop.f32.mrb[15].mxu0 }
 0x6c9   : > { %p2263_p1 = scmp.ne.s32.totalorder %s3313_s17, 1 }
 0x6ca   : > { %vm1919_vm12 = vcmask (!%p2263_p1), 253952   ;;  %vm2695_vm13 = vmmov (!%p2263_p1), 0   ;;  %s3315_s27 = sld [smem:[#allocation26_spill]] (!%p2263_p1)  ;;  %s3316_s26 = sld [smem:[#allocation27_spill]] (!%p2263_p1)  ;;  %vm1996_vm14 = vcmask (!%p2263_p1), 73728  }
 0x6cb   : > { %s3317_s19 = sld [smem:[#allocation29_spill]] (!%p2263_p1) }
 0x6ef   : > { %v1492_v27 = vpop.f32.mrb[16].mxu0 }
 0x6f0   : > { %1614 = vrot.lane.b32.xlu1 %v1492_v27, %s2692_s7  ;;  %v2376_v28 = vpop.f32.mrb[17].mxu0  ;;  %v2254_v27 = vld [vmem:[%s857_s21] ss:$0 sm:$0xff]  ;;  %s3314_s7 = sld [smem:[#allocation28_spill]] (!%p2263_p1) }
 0x6f1   : > { %v1495_v29 = vpop.f32.mrb[18].mxu0 }
 0x6f2   : > { %v2377_v30 = vpop.f32.mrb[19].mxu0 }
 0x6f7   : > { %v1603_v31 = vpop.f32.mrb[20].mxu0 }
 0x6f8   : > { %1618 = vrot.lane.b32.xlu0 %v1603_v31, %s2693_s0  ;;  %v2388_v32 = vpop.f32.mrb[21].mxu0 }
 0x6f9   : > { %v1606_v33 = vpop.f32.mrb[22].mxu0 }
 0x6fa   : > { %v2389_v35 = vpop.f32.mrb[23].mxu0 }
 0x735   : > { %v1611_v36 = vpop.permute.xlu0 %1610 }
 0x736   : > { %v1621_v38 = vsel %vm1162_vm5, %v1270_v17, %v1611_v36 }
 0x762   : > { %v1615_v37 = vpop.permute.xlu1 %1614 }
 0x763   : > { %v1623_v39 = vsel %vm1622_vm10, %v1621_v38, %v1615_v37 }
 0x76a   : > { %v1619_v40 = vpop.permute.xlu0 %1618 }
 0x76b   : > { %v1625_v41 = vsel %vm1624_vm11, %v1623_v39, %v1619_v40 }
 0x76c   : > { %v1626_v43 = vpack.c.bf16 %v1625_v41, %v1625_v41  ;;  %v2577_v41 = vld [vmem:[%s3314_s7] sm:$0xff] (!%p2263_p1)  }
 0x76e   : > { %2395 = vmatmul.mubr.msk.bf16.vlgmr.msra.gmra.mrb[12].mxu1 %vm1114_vm4, %v1626_v43  ;;  %v2694_v43 = vmov (!%p2263_p1), 0.0  }
 0x76f   : > { %2422 = vmatprep.mubr.msk.bf16.mxu1 %vm2678_vm3, %v2677_v42  ;;  %2407 = vmatpush3.bf16.msra.mxu1 %v2547_v4 }
 0x770   : > { %2408 = vmatprep.subr.bf16.mxu1 %v2677_v42 }
 0x773   : > { %2409 = vmatpush3.bf16.msra.mxu1 %v2548_v5 }
 0x774   : > { %2410 = vmatprep.subr.bf16.mxu1 %v2677_v42 }
 0x777   : > { %2411 = vmatpush3.bf16.msra.mxu1 %v2549_v6 }
 0x778   : > { %2412 = vmatprep.subr.bf16.mxu1 %v2677_v42 }
 0x77b   : > { %2413 = vmatpush3.bf16.msra.mxu1 %v2550_v7 }
 0x77c   : > { %2414 = vmatprep.subr.bf16.mxu1 %v2677_v42 }
 0x77f   : > { %2415 = vmatpush3.bf16.msra.mxu1 %v2551_v8 }
 0x780   : > { %2416 = vmatprep.subr.bf16.mxu1 %v2677_v42 }
 0x783   : > { %2417 = vmatpush3.bf16.msra.mxu1 %v2552_v9 }
 0x784   : > { %2418 = vmatprep.subr.bf16.mxu1 %v2677_v42 }
 0x787   : > { %2419 = vmatpush3.bf16.msra.mxu1 %v2553_v10 }
 0x788   : > { %2420 = vmatprep.subr.bf16.mxu1 %v2677_v42 }
 0x78b   : > { %2421 = vmatpush3.bf16.msra.mxu1 %v2554_v11 }
 0x841   : > { %v1687_v45 = vpop.f32.mrb[12].mxu1 }
 0x842   : > { %v1688_v46 = vadd.f32 %v2244_v44, %v1687_v45  ;;  %v2396_v47 = vpop.f32.mrb[13].mxu1  ;;  %v2578_v44 = vld [vmem:[%s3314_s7 + $0x8] sm:$0xff] (!%p2263_p1)  }
 0x843   : > { %v1690_v48 = vpop.f32.mrb[14].mxu1 }
 0x844   : > { %v3111_v49 = vadd.f32 %v1688_v46, %v3005_v34  ;;  %v2397_v50 = vpop.f32.mrb[15].mxu1  ;;  %v2546_v34 = vld [vmem:[%s2926_s28 + $0x8] sm:$0xff]   ;;  %s3311_s28 = scalar_lea.vmem %s3242_s12, %s2881_s2 }
 0x845   : > { %2401 = vmatpush3.bf16.msra.mxu0 %v2546_v34  ;;  %v2249_v1 = vld [vmem:[%s3311_s28] ss:$0 sm:$0xff] }
 0x846   : > { %v1696_v51 = vsel %vm1061_vm2, %v3111_v49, 0.0  ;;  %2426 = vmatprep.subr.bf16.mxu0 (!%p2263_p1), %v2694_v43 }
 0x847   : > { %1697 = vadd.xlane.f32.xlu1 %v1696_v51  ;;  %v1918_v51 = vld [vmem:[%s3316_s26] sm:$0x1] (!%p2263_p1) }
 0x8d4   : > { %v1698_v52 = vpop.xlane.xlu1 %1697 }
 0x8d5   : > { %v1699_v53 = vmul.f32 0.03125, %v1698_v52 }
 0x8d7   : > { %v1700_v54 = vsub.f32 %v3111_v49, %v1699_v53 }
 0x8d9   : > { %v1701_v55 = vmul.f32 %v1700_v54, %v1700_v54 }
 0x8db   : > { %v1702_v56 = vsel %vm1061_vm2, %v1701_v55, 0.0  ;;  %v1940_v55 = vld [vmem:[%s3317_s19] sm:$0x1] (!%p2263_p1) }
 0x8dc   : > { %1703 = vadd.xlane.f32.xlu0 %v1702_v56 }
 0x969   : > { %v1704_v58 = vpop.xlane.xlu0 %1703 }
 0x96a   : > { %v1705_v60 = vmul.f32 0.03125, %v1704_v58 }
 0x96c   : > { %v1706_v61 = vadd.f32 1e-06, %v1705_v60 }
 0x96e   : > { %2573 = vrsqrt.f32 %v1706_v61 }
 0x978   : > { %v2574_v62 = vpop.eup %2573 }
 0x979   : > { %v1708_v0 = vmul.f32 %v2574_v62, %v1700_v54 }
 0x97b   : > { %v1715_v59 = vmul.f32 %v2248_v63, %v1708_v0 }
 0x97d   : > { %v1722_v2 = vadd.f32 %v2249_v1, %v1715_v59 }
 0x97f   : > { %v1723_v3 = vpack.c.bf16 %v1722_v2, %v1722_v2 }
 0x981   : > { %2403 = vmatmul.mubr.msk.bf16.vlgmr.msra.gmra.mrb[24].mxu0 %vm1114_vm4, %v1723_v3 }
 0x982   : > { %2430 = vmatprep.mubr.msk.bf16.mxu0 (!%p2263_p1), %vm2695_vm13, %v2694_v43  ;;  %2427 = vmatpush3.bf16.msra.mxu0 (!%p2263_p1), %v2577_v41 }
 0x983   : > { %2428 = vmatprep.subr.bf16.mxu0 (!%p2263_p1), %v2694_v43 }
 0x986   : > { %2429 = vmatpush3.bf16.msra.mxu0 (!%p2263_p1), %v2578_v44 }
 0xa54   : > { %v1784_v13 = vpop.f32.mrb[24].mxu0 }
 0xa55   : > { %v1785_v14 = vadd.f32 %v2250_v12, %v1784_v13  ;;  %v2404_v15 = vpop.f32.mrb[25].mxu0 }
 0xa56   : > { %v1787_v16 = vpop.f32.mrb[26].mxu0 }
 0xa57   : > { %v1790_v17 = vmul.f32 %v1785_v14, %v1785_v14  ;;  %v2405_v18 = vpop.f32.mrb[27].mxu0 }
 0xa59   : > { %v1791_v19 = vmul.f32 %v1790_v17, %v1785_v14 }
 0xa5b   : > { %v1792_v20 = vmul.f32 0.044715, %v1791_v19 }
 0xa5d   : > { %v1793_v21 = vadd.f32 %v1792_v20, %v1785_v14 }
 0xa5f   : > { %v1794_v22 = vmul.f32 0.7978846, %v1793_v21 }
 0xa61   : > { %2575 = vtanh.f32 %v1794_v22 }
 0xa6b   : > { %v2576_v23 = vpop.eup %2575 }
 0xa6c   : > { %v1796_v42 = vadd.f32 1.0, %v2576_v23 }
 0xa6e   : > { %v1797_v24 = vmul.f32 0.5, %v1796_v42 }
 0xa70   : > { %v1798_v25 = vmul.f32 %v1797_v24, %v1785_v14 }
 0xa72   : > { %v1799_v26 = vpack.c.bf16 %v1798_v25, %v1798_v25 }
 0xa74   : > { %2423 = vmatmul.mubr.bf16.vlgmr.msra.gmra.mrb[16].mxu1 %v1799_v26 }
 0xb46   : > { %1916 = sbr.rel (%p2263_p1) target bundleno = 3422 (0xd5e), region = 112 }
 0xb47   : > { %v1905_v28 = vpop.f32.mrb[16].mxu1 }
 0xb48   : > { %v1906_v29 = vadd.f32 %v2254_v27, %v1905_v28  ;;  %v2424_v30 = vpop.f32.mrb[17].mxu1 }
 0xb49   : > { %v1908_v31 = vpop.f32.mrb[18].mxu1 }
 0xb4a   : > { %v1911_v32 = vadd.f32 %v1906_v29, %v3111_v49  ;;  %v2425_v33 = vpop.f32.mrb[19].mxu1  ;;  %v1917_v49 = vld [vmem:[%s3315_s27] sm:$0x1] (!%p2263_p1) }
 0xb4c   : > { %1912 = vst.msk [vmem:[#allocation2] sm:$0x1f] %vm1061_vm2, %v1911_v32  ;;  %v1920_v35 = vsel (!%p2263_p1), %vm1919_vm12, %v1911_v32, 0.0 }
 0xb4d   : > { %1921 = vadd.xlane.f32.xlu0 %v1920_v35 }
 0xbda   : > { %v1922_v36 = vpop.xlane.xlu0 %1921 }
 0xbdb   : > { %v1923_v37 = vmul.f32 0.03125, %v1922_v36 }
 0xbdd   : > { %v1924_v38 = vsub.f32 %v1911_v32, %v1923_v37 }
 0xbdf   : > { %v1925_v39 = vmul.f32 %v1924_v38, %v1924_v38 }
 0xbe1   : > { %v1926_v40 = vsel %vm1919_vm12, %v1925_v39, 0.0 }
 0xbe2   : > { %1927 = vadd.xlane.f32.xlu0 %v1926_v40 }
 0xc6f   : > { %v1928_v45 = vpop.xlane.xlu0 %1927 }
 0xc70   : > { %v1929_v46 = vmul.f32 0.03125, %v1928_v45 }
 0xc72   : > { %v1930_v47 = vadd.f32 1e-06, %v1929_v46 }
 0xc74   : > { %2579 = vrsqrt.f32 %v1930_v47 }
 0xc7e   : > { %v2580_v48 = vpop.eup %2579 }
 0xc7f   : > { %v1932_v50 = vmul.f32 %v2580_v48, %v1924_v38 }
 0xc81   : > { %v1933_v52 = vmul.f32 %v1932_v50, %v1917_v49 }
 0xc83   : > { %v1934_v53 = vadd.f32 %v1933_v52, %v1918_v51 }
 0xc85   : > { %v1935_v54 = vpack.c.bf16 %v1934_v53, %v1934_v53 }
 0xc87   : > { %2431 = vmatmul.mubr.msk.bf16.vlgmr.msra.gmra.mrb[0].mxu0 %vm1114_vm4, %v1935_v54 }
 0xd5a   : > { %v1990_v56 = vpop.f32.mrb[0].mxu0 }
 0xd5b   : > { %v1991_v57 = vadd.f32 %v1990_v56, %v1940_v55  ;;  %v2432_v34 = vpop.f32.mrb[1].mxu0 }
 0xd5c   : > { %v1993_v58 = vpop.f32.mrb[2].mxu0 }
 0xd5d   : > { %1997 = vst.msk [vmem:[%s2944_s18] sm:$0x1] %vm1996_vm14, %v1991_v57  ;;  %v2433_v60 = vpop.f32.mrb[3].mxu0 }
 0xd5e PF: > { %s3318_s9 = sld [smem:[#allocation9_spill]]  ;;  %s3320_s2 = sld [smem:[#allocation30_spill]] }
 0xd5f   : > { %s2011_s4 = sshll.u32 %s2944_s18, 4  ;;  %s3322_s22 = sand.u32 1, %s2651_s25   ;;  %s2012_s4 = int_to_ptr.vmem [resolvable:$true] %s2011_s4 }
 0xd60   : > { %s1999_s20 = scalar_lea.sflag [#allocation4], %s3322_s22  ;;  %s2581_s27 = scalar_lea.vmem %s2012_s4, 16 }
 0xd61   : > { %p2582_p2 = scmp.ne.s32.totalorder %s2012_s4, %s2581_s27  ;;  %s2696_s29 = smov [#allocation3]  }
 0xd62   : > { %s2585_s30 = sshll.u32 %s2696_s29, 4  ;;  %s2586_s30 = int_to_ptr.vmem [resolvable:$false] %s2585_s30 }
 0xd63   : > { %p2583_p4 = pnand %p2582_p2, %p2856_p3  ;;  %s2587_s26 = scalar_lea.vmem %s2586_s30, 32 }
 0xd64   : > { %s2267_s3 = sshll.u32 %s3318_s9, 4  ;;  %s3321_s21 = smov %s3320_s2 }
 0xd65   : > { %s3180_s0 = scalar_lea.hbm %s3320_s2, %s2267_s3  ;;  %p2584_p5 = pneg %p2583_p4 }
 0xd66   : > { %p2588_p6 = scmp.lt.s32.totalorder %s2012_s4, %s2586_s30  ;;  %p2589_p7 = scmp.lt.s32.totalorder %s2587_s26, %s2581_s27 }
 0xd68   : > { %p2590_p8 = por %p2589_p7, %p2588_p6 }
 0xd6a   : > { %p2591_p10 = pnand %p2590_p8, %p2584_p5 }
 0xd6c   : > { %2594 = shalt.err (!%p2591_p10)
}
 0xd6d   : > { %s2595_s18 = scalar_lea.hbm %s3180_s0, 16  ;;  %s2599_s19 = scalar_lea.hbm %s3321_s21, 32 }
 0xd6e   : > { %p2596_p11 = scmp.ne.s32.totalorder %s3180_s0, %s2595_s18  ;;  %p2600_p0 = scmp.lt.u32.totalorder %s3180_s0, %s3321_s21 }
 0xd6f   : > { %p2601_p1 = scmp.lt.u32.totalorder %s2599_s19, %s2595_s18  ;;  %p2603_p4 = scmp.lt.u32.totalorder %s2595_s18, %s3180_s0 }
 0xd70   : > { %p2597_p12 = pnand %p2596_p11, %p2856_p3 }
 0xd71   : > { %p2602_p2 = por %p2601_p1, %p2600_p0 }
 0xd72   : > { %p2598_p13 = pneg %p2597_p12 }
 0xd73   : > { %p2604_p5 = por %p2603_p4, %p2602_p2 }
 0xd75   : > { %p2605_p6 = pnand %p2604_p5, %p2598_p13 }
 0xd77   : > { %2608 = shalt.err (!%p2605_p6)
}
 0xd78   : > { %2434 = dma.vmem_to_hbm [thread:$0]  (%p2856_p3), %s2012_s4, 16, %s3180_s0, %s1999_s20  }
 0xd79 PF: > { %s3323_s1 = sld [smem:[#allocation12_spill]]  ;;  %s3324_s17 = sld [smem:[#allocation6_spill]] }
 0xd7f   : > { %p2440_p7 = scmp.ge.s32.totalorder %s3323_s1, 2  ;;  %s2023_s22 = sand.u32 1, %s3324_s17  }
 0xd80   : > { %s2024_s27 = scalar_lea.sflag [#allocation4], %s2023_s22 }
 0xd81   : > { %p2437_p8 = pnand %p2440_p7, %p2866_p9 }
 0xd83   : > { %2642 = dma.done.wait (!%p2437_p8), %s2024_s27, 16  }
 0xd84   : > { %2644 = vsyncadd (!%p2437_p8), %s2024_s27, 4294967280  ;;  %s34_s0 = sadd.s32 1, %s3323_s1   ;;  %s3326_s29 = sld [smem:[#allocation7_spill]] }
 0xd85   : > { %p31_p10 = scmp.ge.s32.totalorder %s34_s0, 6   ;;  %s3327_s26 = sld [smem:[#allocation17_spill]] }
 0xd86   : > { %s3328_s27 = sld [smem:[#allocation10_spill]]  ;;  %s3329_s3 = sld [smem:[#allocation11_spill]] }
 0xd87   : > { %s3330_s28 = sld [smem:[#allocation13_spill]]  ;;  %s3331_s23 = sld [smem:[#allocation15_spill]] }
 0xd88   : > { %s3332_s2 = smov %s2651_s25  ;;  %33 = sbr.rel (!%p31_p10) target bundleno = 19 (0x13), region = 183 }
 0xd8a   : > { %s3333_s25 = smov %s3326_s29 }
 0xd8d   : > { %s3334_s29 = smov %s3331_s23 }
 0xd8f   :  { %2028 = vsyncpa [#allocation4], 1 }
 0xd90   :  { %2030 = vsyncpa [#allocation4 + $0x1], 1 }

</bundles_post_ra>
